<compile_context>
chip_gen: v5e
topology: v5e:2x2
jax: 0.10.0
libtpu: 0.0.40
codegen_flags: <defaults>
</compile_context>

<pallas_src>
import functools
import math

import jax
import jax.numpy as jnp
from jax import lax
from jax.experimental import pallas as pl
from jax.experimental.pallas import tpu as pltpu

_NEG_BIG = -1e30        # finite "minus infinity" (avoids inf-inf NaNs on padded rows)
_OUT_LANES = 128        # lane-dense output width


def _supcon_kernel(q_ref, kT_ref, lab_q_ref, lab_k_ref, msum_ref, out_ref,
                   l_ref, sraw_ref, *opt_scratch, m_const: float,
                   temp_over_base: float, batch: int, assume_normalized: bool):
    i = pl.program_id(0)            # query-row tile index
    j = pl.program_id(1)            # key-column tile index (reduction axis)
    tq = q_ref.shape[0]
    tk = kT_ref.shape[1]
    m_ref = opt_scratch[0] if opt_scratch else None   # only for the online-max path

    @pl.when(j == 0)
    def _init():
        l_ref[...] = jnp.zeros_like(l_ref)
        sraw_ref[...] = jnp.zeros_like(sraw_ref)
        if m_ref is not None:
            m_ref[...] = jnp.full(m_ref.shape, _NEG_BIG, jnp.float32)

    # 1/T is already folded into K^T by the wrapper, so raw == sim / T.
    raw = jnp.dot(q_ref[...], kT_ref[...], preferred_element_type=jnp.float32)  # [tq,tk] f32
    pos_lab = lab_q_ref[...] == lab_k_ref[...]                                   # [tq,tk] bool

    if assume_normalized:
        # L2-normalized features: row max (diagonal included, as in the
        # reference) equals 1/T exactly, so exp(raw - 1/T) cannot overflow.
        e = jnp.exp(raw - m_const)

        q_lo = i * tq
        k_lo = j * tk
        has_diag = jnp.logical_and(k_lo < q_lo + tq, q_lo < k_lo + tk)
        has_pad = (k_lo + tk) > batch
        boundary = jnp.logical_or(has_diag, has_pad)

        @pl.when(jnp.logical_not(boundary))
        def _interior():
            # Fast path: no diagonal, no padded columns -> no mask selects.
            l_ref[...] += jnp.sum(e, axis=1, keepdims=True)
            sraw_ref[...] += jnp.sum(jnp.where(pos_lab, raw, 0.0),
                                     axis=1, keepdims=True)

        @pl.when(boundary)
        def _edge():
            col_g = k_lo + lax.broadcasted_iota(jnp.int32, (1, tk), 1)
            row_g = q_lo + lax.broadcasted_iota(jnp.int32, (tq, 1), 0)
            keep = jnp.logical_and(col_g < batch, row_g != col_g)
            l_ref[...] += jnp.sum(jnp.where(keep, e, 0.0), axis=1, keepdims=True)
            pos = jnp.logical_and(pos_lab, keep)
            sraw_ref[...] += jnp.sum(jnp.where(pos, raw, 0.0),
                                     axis=1, keepdims=True)
    else:
        # Fallback for un-normalized features: flash-style online max.
        col_g = j * tk + lax.broadcasted_iota(jnp.int32, (1, tk), 1)
        row_g = i * tq + lax.broadcasted_iota(jnp.int32, (tq, 1), 0)
        valid_col = col_g < batch
        keep = jnp.logical_and(valid_col, row_g != col_g)
        m_prev = m_ref[...]
        m_new = jnp.maximum(
            m_prev,
            jnp.max(jnp.where(valid_col, raw, _NEG_BIG), axis=1, keepdims=True))
        p = jnp.where(keep, jnp.exp(raw - m_new), 0.0)
        l_ref[...] = (jnp.exp(m_prev - m_new) * l_ref[...]
                      + jnp.sum(p, axis=1, keepdims=True))
        m_ref[...] = m_new
        pos = jnp.logical_and(pos_lab, keep)
        sraw_ref[...] += jnp.sum(jnp.where(pos, raw, 0.0), axis=1, keepdims=True)

    @pl.when(j == pl.num_programs(1) - 1)
    def _finalize():
        m_f = m_const if assume_normalized else m_ref[...]
        msum = msum_ref[...]                                  # [tq,1] f32, precomputed
        log_denom = jnp.log(l_ref[...] + 1e-6)
        # sum_j mask*log_prob = sraw - msum * (m + log(denom))
        s = sraw_ref[...] - msum * (m_f + log_denom)
        msum_safe = jnp.where(msum == 0.0, 1.0, msum)
        loss_col = (-temp_over_base) * (s / msum_safe)        # [tq, 1]
        # Lane-dense store (unmasked vst); wrapper reads column 0.
        out_ref[...] = jnp.broadcast_to(loss_col, (tq, _OUT_LANES))


def _round_up(x: int, m: int) -> int:
    return (x + m - 1) // m * m


def _pick_tile(limit: int, target: int) -> int:
    # powers-of-two multiples of 128, clamped to `limit`.
    t = 128
    while t * 2 <= limit and t * 2 <= target:
        t *= 2
    return t


def supervised_contrastive_loss(features: jax.Array,
                                labels: jax.Array,
                                temperature: float = 0.07,
                                base_temperature: float = 0.07,
                                reduction: str = 'mean',
                                block_q: int | None = None,
                                block_k: int | None = None,
                                assume_normalized: bool = True) -> jax.Array:
    """features: [B, D] (assumed L2-normalized, any float dtype), labels: [B] int."""
    B, D = features.shape
    if B == 1:
        raise ValueError('Batch size must be greater than 1 for contrastive loss')

    b128 = _round_up(B, 128)
    D_pad = _round_up(D, 128)
    itemsize = jnp.dtype(features.dtype).itemsize

    # (tq, tk) = (512, 256): larger tq halves total K^T re-streaming, tk=256
    # matches the v6e/v7x 256-wide MXU (two clean 128 passes on v5e).  tq is
    # capped so that >=2 q tiles exist whenever possible (v7x has 2 TCs and
    # the q-tile axis is the "parallel" one).
    tq = block_q if block_q is not None else _pick_tile(max(b128 // 2, 128), 512)
    tk = block_k if block_k is not None else _pick_tile(b128, 256)

    def vmem_need(tq_, tk_):
        return (2 * tq_ * D_pad * itemsize       # Q tile, double-buffered
                + 2 * D_pad * tk_ * itemsize     # K^T tile, double-buffered
                + 2 * tq_ * _OUT_LANES * 4       # output tile, double-buffered
                + 3 * tq_ * 128 * 4              # lane-padded scratch accumulators
                + 4 * tq_ * tk_ * 4              # f32 [tq,tk] in-body temporaries
                + (4 << 20))                     # Mosaic-internal headroom

    if block_q is None or block_k is None:
        budget = 56 << 20                        # fits v7x's 64 MiB VMEM with margin
        while vmem_need(tq, tk) > budget and tq > 128:
            tq //= 2
        while vmem_need(tq, tk) > budget and tk > 128:
            tk //= 2
    assert tq % 8 == 0 and tk % 128 == 0

    B_pad = _round_up(B, math.lcm(tq, tk))

    f = features
    if (B_pad, D_pad) != (B, D):
        f = jnp.pad(f, ((0, B_pad - B), (0, D_pad - D)))
    inv_temp = 1.0 / float(temperature)
    # Fold 1/T into the pre-transposed K side once here (XLA fuses the scale
    # into the transpose) instead of scaling the Q tile on every grid step.
    f_t = jnp.transpose(f) * jnp.asarray(inv_temp, dtype=f.dtype)   # [D_pad, B_pad]
    # TODO(synk): for tiny grids (B_pad/tq <= 4) an untransposed K block with a
    #             dot_general contracting on dim 1 may beat the explicit transpose.

    lab = labels.astype(jnp.int32)
    # Per-row positive count (same label, off-diagonal) precomputed once; this
    # removes a bool->f32 cast + XLU row-sum from every grid step.  O(B^2) int
    # compares here are negligible next to the B^2*D matmul.
    msum = jnp.sum((lab[:, None] == lab[None, :]).astype(jnp.float32), axis=1) - 1.0
    if B_pad != B:
        lab = jnp.pad(lab, (0, B_pad - B), constant_values=-1)
        msum = jnp.pad(msum, (0, B_pad - B))
    lab_col = lab.reshape(B_pad, 1)
    lab_row = lab.reshape(1, B_pad)
    msum_col = msum.reshape(B_pad, 1)

    kernel = functools.partial(
        _supcon_kernel,
        m_const=inv_temp,
        temp_over_base=float(temperature) / float(base_temperature),
        batch=B,
        assume_normalized=assume_normalized,
    )

    scratch = [pltpu.VMEM((tq, 1), jnp.float32)] * 2          # l (denom), sraw
    if not assume_normalized:
        scratch = scratch + [pltpu.VMEM((tq, 1), jnp.float32)]  # running max m

    vmem_limit = int(min(max(_round_up(vmem_need(tq, tk), 1 << 20) + (8 << 20),
                             32 << 20), 60 << 20))

    out = pl.pallas_call(
        kernel,
        out_shape=jax.ShapeDtypeStruct((B_pad, _OUT_LANES), jnp.float32),
        grid_spec=pltpu.PrefetchScalarGridSpec(
            num_scalar_prefetch=0,
            grid=(B_pad // tq, B_pad // tk),
            in_specs=[
                pl.BlockSpec((tq, D_pad), lambda i, j: (i, 0)),   # Q rows
                pl.BlockSpec((D_pad, tk), lambda i, j: (0, j)),   # K^T cols (1/T folded in)
                pl.BlockSpec((tq, 1), lambda i, j: (i, 0)),       # labels of Q rows
                pl.BlockSpec((1, tk), lambda i, j: (0, j)),       # labels of K cols
                pl.BlockSpec((tq, 1), lambda i, j: (i, 0)),       # precomputed positive counts
            ],
            out_specs=pl.BlockSpec((tq, _OUT_LANES), lambda i, j: (i, 0)),
            scratch_shapes=scratch,
        ),
        compiler_params=pltpu.CompilerParams(
            dimension_semantics=("parallel", "arbitrary"),
            vmem_limit_bytes=vmem_limit,
        ),
    )(f, f_t, lab_col, lab_row, msum_col)

    loss_rows = out[:B, 0]
    if reduction == 'mean':
        return jnp.mean(loss_rows)
    if reduction == 'sum':
        return jnp.sum(loss_rows)
    return loss_rows     # reduction == 'none' -> [B] vector, matching the PyTorch module


def _reference_loss(features, labels, temperature=0.07, base_temperature=0.07,
                    reduction='mean'):
    B = features.shape[0]
    f = features.astype(jnp.float32)
    sim = f @ f.T
    mask = (labels.reshape(-1, 1) == labels.reshape(1, -1)).astype(jnp.float32)
    logits_mask = jnp.ones((B, B), jnp.float32) - jnp.eye(B, dtype=jnp.float32)
    mask = mask * logits_mask
    logits = sim / temperature
    logits = logits - jnp.max(logits, axis=1, keepdims=True)
    exp_logits = jnp.exp(logits) * logits_mask
    log_prob = logits - jnp.log(jnp.sum(exp_logits, axis=1, keepdims=True) + 1e-6)
    mask_sum = jnp.sum(mask, axis=1)
    mask_sum = jnp.where(mask_sum == 0, 1.0, mask_sum)
    mean_log_prob_pos = jnp.sum(mask * log_prob, axis=1) / mask_sum
    loss = -(temperature / base_temperature) * mean_log_prob_pos
    if reduction == 'mean':
        return jnp.mean(loss)
    if reduction == 'sum':
        return jnp.sum(loss)
    return loss


if __name__ == "__main__":
    key = jax.random.PRNGKey(0)
    kf, kl, kf2, kl2, kf3, kl3 = jax.random.split(key, 6)

    # Case 1: tiny shapes from the module spec (single tile, padded B and D).
    B, D = 8, 32
    feats = jax.random.normal(kf, (B, D), dtype=jnp.float32)
    feats = feats / jnp.linalg.norm(feats, axis=1, keepdims=True)   # L2-normalize
    labels = jax.random.randint(kl, (B,), 0, 3, dtype=jnp.int32)
    loss = jax.block_until_ready(supervised_contrastive_loss(feats, labels))
    ref = _reference_loss(feats, labels)
    assert jnp.allclose(loss, ref, atol=1e-4, rtol=1e-4), (loss, ref)

    # Case 2: padded batch + multi-tile grid -> exercises interior fast path
    # and boundary (diag/padded-column) path of the constant-max kernel.
    B2, D2 = 200, 48
    feats2 = jax.random.normal(kf2, (B2, D2), dtype=jnp.float32)
    feats2 = feats2 / jnp.linalg.norm(feats2, axis=1, keepdims=True)
    labels2 = jax.random.randint(kl2, (B2,), 0, 7, dtype=jnp.int32)
    loss2 = jax.block_until_ready(
        supervised_contrastive_loss(feats2, labels2, block_q=128, block_k=128))
    ref2 = _reference_loss(feats2, labels2)
    assert jnp.allclose(loss2, ref2, atol=1e-4, rtol=1e-4), (loss2, ref2)

    # Case 3: reduction='none' returns the per-sample [B] vector.
    loss_vec = jax.block_until_ready(
        supervised_contrastive_loss(feats2, labels2, reduction='none',
                                    block_q=128, block_k=128))
    ref_vec = _reference_loss(feats2, labels2, reduction='none')
    assert loss_vec.shape == (B2,)
    assert jnp.allclose(loss_vec, ref_vec, atol=1e-4, rtol=1e-4)

    # Case 4: online-max fallback path (assume_normalized=False).
    loss3 = jax.block_until_ready(
        supervised_contrastive_loss(feats2, labels2, block_q=128, block_k=128,
                                    assume_normalized=False))
    assert jnp.allclose(loss3, ref2, atol=1e-4, rtol=1e-4), (loss3, ref2)

    # Case 5: default tile selection (tk=256) with padding and a 4x2 grid.
    B3, D3 = 300, 64
    feats3 = jax.random.normal(kf3, (B3, D3), dtype=jnp.float32)
    feats3 = feats3 / jnp.linalg.norm(feats3, axis=1, keepdims=True)
    labels3 = jax.random.randint(kl3, (B3,), 0, 11, dtype=jnp.int32)
    loss4 = jax.block_until_ready(supervised_contrastive_loss(feats3, labels3))
    ref4 = _reference_loss(feats3, labels3)
    assert jnp.allclose(loss4, ref4, atol=1e-4, rtol=1e-4), (loss4, ref4)

    print("KERNEL_OK")
</pallas_src>

<mosaic_0001>
module attributes {stable_mosaic.version = 11 : i64} {
  func.func @_supcon_kernel(%arg0: i32, %arg1: i32, %arg2: memref<128x128xf32, #tpu.memory_space<vmem>>, %arg3: memref<128x128xf32, #tpu.memory_space<vmem>>, %arg4: memref<128x1xi32, #tpu.memory_space<vmem>>, %arg5: memref<1x128xi32, #tpu.memory_space<vmem>>, %arg6: memref<128x1xf32, #tpu.memory_space<vmem>>, %arg7: memref<128x128xf32, #tpu.memory_space<vmem>>, %arg8: memref<128x1xf32, #tpu.memory_space<vmem>>, %arg9: memref<128x1xf32, #tpu.memory_space<vmem>>) attributes {dimension_semantics = [#tpu.dimension_semantics<parallel>, #tpu.dimension_semantics<arbitrary>], iteration_bounds = array<i64: 1, 1>, scalar_prefetch = 0 : i64, scratch_operands = 2 : i64, tpu.core_type = #tpu.core_type<tc>, window_params = [{transform_indices = @transform_0, window_bounds = array<i64: 128, 128>}, {transform_indices = @transform_1, window_bounds = array<i64: 128, 128>}, {transform_indices = @transform_2, window_bounds = array<i64: 128, 1>}, {transform_indices = @transform_3, window_bounds = array<i64: 1, 128>}, {transform_indices = @transform_4, window_bounds = array<i64: 128, 1>}, {transform_indices = @transform_5, window_bounds = array<i64: 128, 128>}]} {
    %c0_i32 = arith.constant 0 : i32
    %0 = arith.cmpi eq, %arg1, %c0_i32 : i32
    %1 = arith.extui %0 : i1 to i32
    %c0_i32_0 = arith.constant 0 : i32
    %2 = arith.cmpi ne, %1, %c0_i32_0 : i32
    scf.if %2 {
      %cst_17 = arith.constant 0.000000e+00 : f32
      %32 = vector.broadcast %cst_17 : f32 to vector<128x1xf32>
      %c0_18 = arith.constant 0 : index
      %c0_19 = arith.constant 0 : index
      %33 = vector.load %arg8[%c0_18, %c0_19] : memref<128x1xf32, #tpu.memory_space<vmem>>, vector<128x1xf32>
      tpu.vector_store %arg8[%c0_18, %c0_19], %32 {strides = array<i32>} : memref<128x1xf32, #tpu.memory_space<vmem>>, vector<128x1xf32>,
      %cst_20 = arith.constant 0.000000e+00 : f32
      %34 = vector.broadcast %cst_20 : f32 to vector<128x1xf32>
      %c0_21 = arith.constant 0 : index
      %c0_22 = arith.constant 0 : index
      %35 = vector.load %arg9[%c0_21, %c0_22] : memref<128x1xf32, #tpu.memory_space<vmem>>, vector<128x1xf32>
      tpu.vector_store %arg9[%c0_21, %c0_22], %34 {strides = array<i32>} : memref<128x1xf32, #tpu.memory_space<vmem>>, vector<128x1xf32>,
    } else {
    }
    %c0 = arith.constant 0 : index
    %c0_1 = arith.constant 0 : index
    %3 = vector.load %arg2[%c0, %c0_1] : memref<128x128xf32, #tpu.memory_space<vmem>>, vector<128x128xf32>
    %c0_2 = arith.constant 0 : index
    %c0_3 = arith.constant 0 : index
    %4 = vector.load %arg3[%c0_2, %c0_3] : memref<128x128xf32, #tpu.memory_space<vmem>>, vector<128x128xf32>
    %cst = arith.constant dense<0.000000e+00> : vector<128x128xf32>
    %5 = tpu.matmul %3, %4, %cst {dimension_numbers = #tpu.dot_dimension_numbers<[1], [0], [0], [1], [0, 0, 1, 1], [], []>} : vector<128x128xf32>, vector<128x128xf32>, vector<128x128xf32> -> vector<128x128xf32>
    %c0_4 = arith.constant 0 : index
    %c0_5 = arith.constant 0 : index
    %6 = vector.load %arg4[%c0_4, %c0_5] : memref<128x1xi32, #tpu.memory_space<vmem>>, vector<128x1xi32>
    %c0_6 = arith.constant 0 : index
    %c0_7 = arith.constant 0 : index
    %7 = vector.load %arg5[%c0_6, %c0_7] : memref<1x128xi32, #tpu.memory_space<vmem>>, vector<1x128xi32>
    %8 = vector.broadcast %6 : vector<128x1xi32> to vector<128x128xi32>
    %9 = vector.broadcast %7 : vector<1x128xi32> to vector<128x128xi32>
    %10 = arith.cmpi eq, %8, %9 : vector<128x128xi32>
    %cst_8 = arith.constant 14.2857141 : f32
    %11 = vector.broadcast %cst_8 : f32 to vector<128x128xf32>
    %12 = arith.subf %5, %11 : vector<128x128xf32>
    %13 = math.exp %12 : vector<128x128xf32>
    %c128_i32 = arith.constant 128 : i32
    %14 = arith.muli %arg0, %c128_i32 : i32
    %c128_i32_9 = arith.constant 128 : i32
    %15 = arith.muli %arg1, %c128_i32_9 : i32
    %c128_i32_10 = arith.constant 128 : i32
    %16 = arith.addi %14, %c128_i32_10 : i32
    %17 = arith.cmpi slt, %15, %16 : i32
    %c128_i32_11 = arith.constant 128 : i32
    %18 = arith.addi %15, %c128_i32_11 : i32
    %19 = arith.cmpi slt, %14, %18 : i32
    %20 = arith.andi %17, %19 : i1
    %c128_i32_12 = arith.constant 128 : i32
    %21 = arith.addi %15, %c128_i32_12 : i32
    %c8_i32 = arith.constant 8 : i32
    %22 = arith.cmpi sgt, %21, %c8_i32 : i32
    %23 = arith.ori %20, %22 : i1
    %true = arith.constant true
    %24 = arith.xori %23, %true : i1
    %25 = arith.extui %24 : i1 to i32
    %c0_i32_13 = arith.constant 0 : i32
    %26 = arith.cmpi ne, %25, %c0_i32_13 : i32
    scf.if %26 {
      %c0_17 = arith.constant 0 : index
      %c0_18 = arith.constant 0 : index
      %32 = vector.load %arg8[%c0_17, %c0_18] : memref<128x1xf32, #tpu.memory_space<vmem>>, vector<128x1xf32>
      %cst_19 = arith.constant dense<0.000000e+00> : vector<128xf32>
      %33 = vector.multi_reduction <add>, %13, %cst_19 [1] : vector<128x128xf32> to vector<128xf32>
      %34 = vector.shape_cast %33 : vector<128xf32> to vector<128x1xf32>
      %35 = arith.addf %32, %34 : vector<128x1xf32>
      %c0_20 = arith.constant 0 : index
      %c0_21 = arith.constant 0 : index
      %36 = vector.load %arg8[%c0_20, %c0_21] : memref<128x1xf32, #tpu.memory_space<vmem>>, vector<128x1xf32>
      tpu.vector_store %arg8[%c0_20, %c0_21], %35 {strides = array<i32>} : memref<128x1xf32, #tpu.memory_space<vmem>>, vector<128x1xf32>,
      %c0_22 = arith.constant 0 : index
      %c0_23 = arith.constant 0 : index
      %37 = vector.load %arg9[%c0_22, %c0_23] : memref<128x1xf32, #tpu.memory_space<vmem>>, vector<128x1xf32>
      %cst_24 = arith.constant 0.000000e+00 : f32
      %38 = vector.broadcast %cst_24 : f32 to vector<128x128xf32>
      %39 = arith.select %10, %5, %38 : vector<128x128xi1>, vector<128x128xf32>
      %cst_25 = arith.constant dense<0.000000e+00> : vector<128xf32>
      %40 = vector.multi_reduction <add>, %39, %cst_25 [1] : vector<128x128xf32> to vector<128xf32>
      %41 = vector.shape_cast %40 : vector<128xf32> to vector<128x1xf32>
      %42 = arith.addf %37, %41 : vector<128x1xf32>
      %c0_26 = arith.constant 0 : index
      %c0_27 = arith.constant 0 : index
      %43 = vector.load %arg9[%c0_26, %c0_27] : memref<128x1xf32, #tpu.memory_space<vmem>>, vector<128x1xf32>
      tpu.vector_store %arg9[%c0_26, %c0_27], %42 {strides = array<i32>} : memref<128x1xf32, #tpu.memory_space<vmem>>, vector<128x1xf32>,
    } else {
    }
    %27 = arith.extui %23 : i1 to i32
    %c0_i32_14 = arith.constant 0 : i32
    %28 = arith.cmpi ne, %27, %c0_i32_14 : i32
    scf.if %28 {
      %32 = tpu.iota {dimensions = array<i32: 1>} : vector<1x128xi32>
      %33 = vector.broadcast %15 : i32 to vector<1x128xi32>
      %34 = arith.addi %33, %32 : vector<1x128xi32>
      %35 = tpu.iota {dimensions = array<i32: 0>} : vector<128x1xi32>
      %36 = vector.broadcast %14 : i32 to vector<128x1xi32>
      %37 = arith.addi %36, %35 : vector<128x1xi32>
      %c8_i32_17 = arith.constant 8 : i32
      %38 = vector.broadcast %c8_i32_17 : i32 to vector<1x128xi32>
      %39 = arith.cmpi slt, %34, %38 : vector<1x128xi32>
      %40 = vector.broadcast %37 : vector<128x1xi32> to vector<128x128xi32>
      %41 = vector.broadcast %34 : vector<1x128xi32> to vector<128x128xi32>
      %42 = arith.cmpi ne, %40, %41 : vector<128x128xi32>
      %43 = vector.broadcast %39 : vector<1x128xi1> to vector<128x128xi1>
      %44 = arith.andi %43, %42 : vector<128x128xi1>
      %c0_18 = arith.constant 0 : index
      %c0_19 = arith.constant 0 : index
      %45 = vector.load %arg8[%c0_18, %c0_19] : memref<128x1xf32, #tpu.memory_space<vmem>>, vector<128x1xf32>
      %cst_20 = arith.constant 0.000000e+00 : f32
      %46 = vector.broadcast %cst_20 : f32 to vector<128x128xf32>
      %47 = arith.select %44, %13, %46 : vector<128x128xi1>, vector<128x128xf32>
      %cst_21 = arith.constant dense<0.000000e+00> : vector<128xf32>
      %48 = vector.multi_reduction <add>, %47, %cst_21 [1] : vector<128x128xf32> to vector<128xf32>
      %49 = vector.shape_cast %48 : vector<128xf32> to vector<128x1xf32>
      %50 = arith.addf %45, %49 : vector<128x1xf32>
      %c0_22 = arith.constant 0 : index
      %c0_23 = arith.constant 0 : index
      %51 = vector.load %arg8[%c0_22, %c0_23] : memref<128x1xf32, #tpu.memory_space<vmem>>, vector<128x1xf32>
      tpu.vector_store %arg8[%c0_22, %c0_23], %50 {strides = array<i32>} : memref<128x1xf32, #tpu.memory_space<vmem>>, vector<128x1xf32>,
      %52 = arith.andi %10, %44 : vector<128x128xi1>
      %c0_24 = arith.constant 0 : index
      %c0_25 = arith.constant 0 : index
      %53 = vector.load %arg9[%c0_24, %c0_25] : memref<128x1xf32, #tpu.memory_space<vmem>>, vector<128x1xf32>
      %cst_26 = arith.constant 0.000000e+00 : f32
      %54 = vector.broadcast %cst_26 : f32 to vector<128x128xf32>
      %55 = arith.select %52, %5, %54 : vector<128x128xi1>, vector<128x128xf32>
      %cst_27 = arith.constant dense<0.000000e+00> : vector<128xf32>
      %56 = vector.multi_reduction <add>, %55, %cst_27 [1] : vector<128x128xf32> to vector<128xf32>
      %57 = vector.shape_cast %56 : vector<128xf32> to vector<128x1xf32>
      %58 = arith.addf %53, %57 : vector<128x1xf32>
      %c0_28 = arith.constant 0 : index
      %c0_29 = arith.constant 0 : index
      %59 = vector.load %arg9[%c0_28, %c0_29] : memref<128x1xf32, #tpu.memory_space<vmem>>, vector<128x1xf32>
      tpu.vector_store %arg9[%c0_28, %c0_29], %58 {strides = array<i32>} : memref<128x1xf32, #tpu.memory_space<vmem>>, vector<128x1xf32>,
    } else {
    }
    %c0_i32_15 = arith.constant 0 : i32
    %29 = arith.cmpi eq, %arg1, %c0_i32_15 : i32
    %30 = arith.extui %29 : i1 to i32
    %c0_i32_16 = arith.constant 0 : i32
    %31 = arith.cmpi ne, %30, %c0_i32_16 : i32
    scf.if %31 {
      %c0_17 = arith.constant 0 : index
      %c0_18 = arith.constant 0 : index
      %32 = vector.load %arg6[%c0_17, %c0_18] : memref<128x1xf32, #tpu.memory_space<vmem>>, vector<128x1xf32>
      %c0_19 = arith.constant 0 : index
      %c0_20 = arith.constant 0 : index
      %33 = vector.load %arg8[%c0_19, %c0_20] : memref<128x1xf32, #tpu.memory_space<vmem>>, vector<128x1xf32>
      %cst_21 = arith.constant 9.99999997E-7 : f32
      %34 = vector.broadcast %cst_21 : f32 to vector<128x1xf32>
      %35 = arith.addf %33, %34 : vector<128x1xf32>
      %36 = math.log %35 : vector<128x1xf32>
      %c0_22 = arith.constant 0 : index
      %c0_23 = arith.constant 0 : index
      %37 = vector.load %arg9[%c0_22, %c0_23] : memref<128x1xf32, #tpu.memory_space<vmem>>, vector<128x1xf32>
      %cst_24 = arith.constant 14.2857141 : f32
      %38 = vector.broadcast %cst_24 : f32 to vector<128x1xf32>
      %39 = arith.addf %38, %36 : vector<128x1xf32>
      %40 = arith.mulf %32, %39 : vector<128x1xf32>
      %41 = arith.subf %37, %40 : vector<128x1xf32>
      %cst_25 = arith.constant 0.000000e+00 : f32
      %42 = vector.broadcast %cst_25 : f32 to vector<128x1xf32>
      %43 = arith.cmpf oeq, %32, %42 : vector<128x1xf32>
      %cst_26 = arith.constant 1.000000e+00 : f32
      %44 = vector.broadcast %cst_26 : f32 to vector<128x1xf32>
      %45 = arith.select %43, %44, %32 : vector<128x1xi1>, vector<128x1xf32>
      %46 = arith.divf %41, %45 : vector<128x1xf32>
      %cst_27 = arith.constant -1.000000e+00 : f32
      %47 = vector.broadcast %cst_27 : f32 to vector<128x1xf32>
      %48 = arith.mulf %47, %46 : vector<128x1xf32>
      %49 = vector.shape_cast %48 : vector<128x1xf32> to vector<128x1xf32>
      %50 = vector.broadcast %49 : vector<128x1xf32> to vector<128x128xf32>
      %c0_28 = arith.constant 0 : index
      %c0_29 = arith.constant 0 : index
      %51 = vector.load %arg7[%c0_28, %c0_29] : memref<128x128xf32, #tpu.memory_space<vmem>>, vector<128x128xf32>
      tpu.vector_store %arg7[%c0_28, %c0_29], %50 {strides = array<i32>} : memref<128x128xf32, #tpu.memory_space<vmem>>, vector<128x128xf32>,
    } else {
    }
    return
  }
  func.func @transform_0(%arg0: i32, %arg1: i32) -> (i32, i32) {
    %c0_i32 = arith.constant 0 : i32
    %c0_i32_0 = arith.constant 0 : i32
    return %arg0, %c0_i32 : i32, i32
  }
  func.func @transform_1(%arg0: i32, %arg1: i32) -> (i32, i32) {
    %c0_i32 = arith.constant 0 : i32
    %c0_i32_0 = arith.constant 0 : i32
    return %c0_i32, %arg1 : i32, i32
  }
  func.func @transform_2(%arg0: i32, %arg1: i32) -> (i32, i32) {
    %c0_i32 = arith.constant 0 : i32
    %c0_i32_0 = arith.constant 0 : i32
    return %arg0, %c0_i32 : i32, i32
  }
  func.func @transform_3(%arg0: i32, %arg1: i32) -> (i32, i32) {
    %c0_i32 = arith.constant 0 : i32
    %c0_i32_0 = arith.constant 0 : i32
    return %c0_i32, %arg1 : i32, i32
  }
  func.func @transform_4(%arg0: i32, %arg1: i32) -> (i32, i32) {
    %c0_i32 = arith.constant 0 : i32
    %c0_i32_0 = arith.constant 0 : i32
    return %arg0, %c0_i32 : i32, i32
  }
  func.func @transform_5(%arg0: i32, %arg1: i32) -> (i32, i32) {
    %c0_i32 = arith.constant 0 : i32
    %c0_i32_0 = arith.constant 0 : i32
    return %arg0, %c0_i32 : i32, i32
  }
}

</mosaic_0001>

<bundles_post_ra>
// kernel: tpu_custom_call.1
= control target key start
LH: loop header
LB: loop body
LE: loop exit
PB: predicated region body
PF: predicated region fallthrough
CT: control target
= control target key end

     0   :  { %v1504_v1 = vmov 0   ;;  %s2676_s0 = inlined_call_operand.vmem [shape: f32[128,128], index: 0, kind: input, shape index: {}]   ;;  %s2677_s1 = inlined_call_operand.vmem [shape: f32[128,128], index: 1, kind: input, shape index: {}]   ;;  %s2678_s2 = inlined_call_operand.vmem [shape: s32[128,1], index: 2, kind: input, shape index: {}]   ;;  %s2679_s3 = inlined_call_operand.vmem [shape: s32[1,128], index: 3, kind: input, shape index: {}]   ;;  %s2680_s4 = inlined_call_operand.vmem [shape: f32[128,1], index: 4, kind: input, shape index: {}]   ;;  %s2681_s5 = inlined_call_operand.hbm [shape: f32[128,128], index: 5, kind: output, shape index: {}]  }
   0x1   :  { %v89_v0 = vld [vmem:[%s2677_s1 + $0x78] sm:$0xff]  ;;  %1379 = vset.pattern.permute.xlu1 %v1504_v1  ;;  %1378 = vset.pattern.permute.xlu0 %v1504_v1  ;;  %v157_v2 = vld [vmem:[%s2678_s2 + $0x10] sm:$0xff]  ;;  %v155_v3 = vld [vmem:[%s2678_s2] sm:$0xff] }
   0x2   :  { %90 = vmatpush.msra.mxu0 %v89_v0  ;;  %1325 = vmatpush.msra.mxu1 %v89_v0  ;;  %v88_v4 = vld [vmem:[%s2677_s1 + $0x70] sm:$0xff]  ;;  %v87_v5 = vld [vmem:[%s2677_s1 + $0x68] sm:$0xff]  ;;  %v86_v6 = vld [vmem:[%s2677_s1 + $0x60] sm:$0xff] }
   0x3   :  { %1326 = vmatpush.msra.mxu2 %v89_v0  ;;  %1327 = vmatpush.msra.mxu3 %v89_v0  ;;  %v85_v7 = vld [vmem:[%s2677_s1 + $0x58] sm:$0xff]  ;;  %v156_v9 = vld [vmem:[%s2678_s2 + $0x8] sm:$0xff]  ;;  %v84_v10 = vld [vmem:[%s2677_s1 + $0x50] sm:$0xff] }
   0x4   :  { %179 = vperm.xlu1 %1379, %v157_v2   ;;  %173 = vperm.xlu0 %1378, %v155_v3   ;;  %v158_v8 = vld [vmem:[%s2678_s2 + $0x18] sm:$0xff] }
   0x5   :  { %91 = vmatpush.msra.mxu0 %v88_v4  ;;  %1328 = vmatpush.msra.mxu1 %v88_v4 }
   0x6   :  { %1329 = vmatpush.msra.mxu2 %v88_v4  ;;  %1330 = vmatpush.msra.mxu3 %v88_v4 }
   0x7   :  { %92 = vmatpush.msra.mxu0 %v87_v5  ;;  %1331 = vmatpush.msra.mxu1 %v87_v5 }
   0x8   :  { %1332 = vmatpush.msra.mxu2 %v87_v5  ;;  %1333 = vmatpush.msra.mxu3 %v87_v5 }
   0x9   :  { %93 = vmatpush.msra.mxu0 %v86_v6  ;;  %1334 = vmatpush.msra.mxu1 %v86_v6 }
   0xa   :  { %1335 = vmatpush.msra.mxu2 %v86_v6  ;;  %1336 = vmatpush.msra.mxu3 %v86_v6 }
   0xb   :  { %94 = vmatpush.msra.mxu0 %v85_v7  ;;  %1337 = vmatpush.msra.mxu1 %v85_v7 }
   0xc   :  { %10 = vsyncpa [#allocation5], 0  ;;  %1338 = vmatpush.msra.mxu2 %v85_v7  ;;  %1339 = vmatpush.msra.mxu3 %v85_v7  ;;  %v83_v11 = vld [vmem:[%s2677_s1 + $0x48] sm:$0xff]  ;;  %v82_v12 = vld [vmem:[%s2677_s1 + $0x40] sm:$0xff]  ;;  %v298_v51 = vlaneseq  ;;  %v2685_v0 = vmov 0  ;;  %s1297_s17 = sshll.u32 %s2681_s5, 4  ;;  %s1298_s17 = int_to_ptr.hbm [resolvable:$true] %s1297_s17 }
   0xd   :  { %182 = vperm.xlu1 %1379, %v158_v8   ;;  %176 = vperm.xlu0 %1378, %v156_v9   ;;  %v81_v13 = vld [vmem:[%s2677_s1 + $0x38] sm:$0xff]  ;;  %v161_v15 = vld [vmem:[%s2678_s2 + $0x30] sm:$0xff]  ;;  %v79_v17 = vld [vmem:[%s2677_s1 + $0x28] sm:$0xff]  ;;  %s1507_s18 = smov 128   ;;  %s1508_s19 = smov 8  }
   0xe   :  { %95 = vmatpush.msra.mxu0 %v84_v10  ;;  %1340 = vmatpush.msra.mxu1 %v84_v10  ;;  %v162_v14 = vld [vmem:[%s2678_s2 + $0x38] sm:$0xff]  ;;  %v80_v16 = vld [vmem:[%s2677_s1 + $0x30] sm:$0xff]  ;;  %v78_v18 = vld [vmem:[%s2677_s1 + $0x20] sm:$0xff]  ;;  %v1686_v53 = vshrl.u32 %v298_v51, 7  ;;  %v1688_v54 = vand.u32 127, %v298_v51 }
   0xf   :  { %1341 = vmatpush.msra.mxu2 %v84_v10  ;;  %1342 = vmatpush.msra.mxu3 %v84_v10  ;;  %v77_v19 = vld [vmem:[%s2677_s1 + $0x18] sm:$0xff]  ;;  %v165_v20 = vld [vmem:[%s2678_s2 + $0x50] sm:$0xff]  ;;  %v164_v21 = vld [vmem:[%s2678_s2 + $0x48] sm:$0xff] }
  0x10   :  { %96 = vmatpush.msra.mxu0 %v83_v11  ;;  %1343 = vmatpush.msra.mxu1 %v83_v11  ;;  %v76_v22 = vld [vmem:[%s2677_s1 + $0x10] sm:$0xff]  ;;  %v75_v23 = vld [vmem:[%s2677_s1 + $0x8] sm:$0xff]  ;;  %v74_v24 = vld [vmem:[%s2677_s1] sm:$0xff]  ;;  %v318_v55 = vadd.s32 120, %v1686_v53  ;;  %v314_v56 = vadd.s32 88, %v1686_v53  ;;  %vm336_vm2 = vcmp.lt.s32.totalorder %v1688_v54, 8  ;;  %vm337_vm6 = vcmp.ne.s32.totalorder %v1686_v53, %v1688_v54 }
  0x11   :  { %1344 = vmatpush.msra.mxu2 %v83_v11  ;;  %1345 = vmatpush.msra.mxu3 %v83_v11  ;;  %v58_v25 = vld [vmem:[%s2676_s0] sm:$0xff]  ;;  %v168_v30 = vld [vmem:[%s2678_s2 + $0x68] sm:$0xff]  ;;  %v170_v37 = vld [vmem:[%s2678_s2 + $0x78] sm:$0xff]  ;;  %v304_v9 = vadd.s32 8, %v1686_v53  ;;  %v311_v10 = vadd.s32 64, %v1686_v53  ;;  %v315_v11 = vadd.s32 96, %v1686_v53 }
  0x12   :  { %97 = vmatpush.msra.mxu0 %v82_v12  ;;  %1346 = vmatpush.msra.mxu1 %v82_v12  ;;  %v62_v26 = vld [vmem:[%s2676_s0 + $0x20] sm:$0xff]  ;;  %v59_v32 = vld [vmem:[%s2676_s0 + $0x8] sm:$0xff]  ;;  %v60_v38 = vld [vmem:[%s2676_s0 + $0x10] sm:$0xff]  ;;  %vm352_vm0 = vcmp.ne.s32.totalorder %v318_v55, %v1688_v54  ;;  %vm348_vm1 = vcmp.ne.s32.totalorder %v314_v56, %v1688_v54  ;;  %v317_v8 = vadd.s32 112, %v1686_v53 }
  0x13   :  { %1347 = vmatpush.msra.mxu2 %v82_v12  ;;  %1348 = vmatpush.msra.mxu3 %v82_v12  ;;  %v66_v27 = vld [vmem:[%s2676_s0 + $0x40] sm:$0xff]  ;;  %v63_v33 = vld [vmem:[%s2676_s0 + $0x28] sm:$0xff]  ;;  %v64_v39 = vld [vmem:[%s2676_s0 + $0x30] sm:$0xff]  ;;  %vm338_vm15 = vcmp.ne.s32.totalorder %v304_v9, %v1688_v54 }
  0x14   :  { %98 = vmatpush.msra.mxu0 %v81_v13  ;;  %1349 = vmatpush.msra.mxu1 %v81_v13  ;;  %v70_v28 = vld [vmem:[%s2676_s0 + $0x60] sm:$0xff]  ;;  %v67_v34 = vld [vmem:[%s2676_s0 + $0x48] sm:$0xff]  ;;  %v68_v40 = vld [vmem:[%s2676_s0 + $0x50] sm:$0xff] }
  0x15   :  { %1350 = vmatpush.msra.mxu2 %v81_v13  ;;  %1351 = vmatpush.msra.mxu3 %v81_v13  ;;  %v159_v29 = vld [vmem:[%s2678_s2 + $0x20] sm:$0xff]  ;;  %v71_v35 = vld [vmem:[%s2676_s0 + $0x68] sm:$0xff]  ;;  %v72_v41 = vld [vmem:[%s2676_s0 + $0x70] sm:$0xff] }
  0x16   :  { %194 = vperm.xlu1 %1379, %v162_v14   ;;  %191 = vperm.xlu0 %1378, %v161_v15   ;;  %v167_v31 = vld [vmem:[%s2678_s2 + $0x60] sm:$0xff]  ;;  %v160_v36 = vld [vmem:[%s2678_s2 + $0x28] sm:$0xff]  ;;  %v61_v43 = vld [vmem:[%s2676_s0 + $0x18] sm:$0xff] }
  0x17   :  { %99 = vmatpush.msra.mxu0 %v80_v16  ;;  %1352 = vmatpush.msra.mxu1 %v80_v16  ;;  %v163_v42 = vld [vmem:[%s2678_s2 + $0x40] sm:$0xff]  ;;  %v65_v44 = vld [vmem:[%s2676_s0 + $0x38] sm:$0xff]  ;;  %v169_v48 = vld [vmem:[%s2678_s2 + $0x70] sm:$0xff] }
  0x18   :  { %1353 = vmatpush.msra.mxu2 %v80_v16  ;;  %1354 = vmatpush.msra.mxu3 %v80_v16  ;;  %v69_v45 = vld [vmem:[%s2676_s0 + $0x58] sm:$0xff]  ;;  %vm1707_vm3 = vmand %vm336_vm2, %vm352_vm0  ;;  %v1721_v2 = vld [vmem:[%s2679_s3] ss:$0 sm:$0xff] }
  0x19   :  { %100 = vmatpush.msra.mxu0 %v79_v17  ;;  %1355 = vmatpush.msra.mxu1 %v79_v17  ;;  %v73_v46 = vld [vmem:[%s2676_s0 + $0x78] sm:$0xff]  ;;  %vm1713_vm4 = vmand %vm336_vm2, %vm348_vm1  ;;  %vm345_vm1 = vcmp.ne.s32.totalorder %v311_v10, %v1688_v54  ;;  %v1978_v63 = vld [vmem:[%s2680_s4] sm:$0xff] }
  0x1a   :  { %1356 = vmatpush.msra.mxu2 %v79_v17  ;;  %1357 = vmatpush.msra.mxu3 %v79_v17  ;;  %v166_v47 = vld [vmem:[%s2678_s2 + $0x58] sm:$0xff]  ;;  %v2686_v0 = vsel %vm1713_vm4, 4294967295, %v2685_v0  ;;  %vm1738_vm10 = vmand %vm336_vm2, %vm337_vm6 }
  0x1b   :  { %101 = vmatpush.msra.mxu0 %v78_v18  ;;  %1358 = vmatpush.msra.mxu1 %v78_v18 }
  0x1c   :  { %1359 = vmatpush.msra.mxu2 %v78_v18  ;;  %1360 = vmatpush.msra.mxu3 %v78_v18 }
  0x1d   :  { %102 = vmatpush.msra.mxu0 %v77_v19  ;;  %1361 = vmatpush.msra.mxu1 %v77_v19 }
  0x1e   :  { %1362 = vmatpush.msra.mxu2 %v77_v19  ;;  %1363 = vmatpush.msra.mxu3 %v77_v19 }
  0x1f   :  { %203 = vperm.xlu1 %1379, %v165_v20   ;;  %200 = vperm.xlu0 %1378, %v164_v21  }
  0x20   :  { %103 = vmatpush.msra.mxu0 %v76_v22  ;;  %1364 = vmatpush.msra.mxu1 %v76_v22 }
  0x21   :  { %1365 = vmatpush.msra.mxu2 %v76_v22  ;;  %1366 = vmatpush.msra.mxu3 %v76_v22 }
  0x22   :  { %104 = vmatpush.msra.mxu0 %v75_v23  ;;  %1367 = vmatpush.msra.mxu1 %v75_v23 }
  0x23   :  { %1368 = vmatpush.msra.mxu2 %v75_v23  ;;  %1369 = vmatpush.msra.mxu3 %v75_v23 }
  0x24   :  { %105 = vmatpush.msra.mxu0 %v74_v24  ;;  %1370 = vmatpush.msra.mxu1 %v74_v24 }
  0x25   :  { %1371 = vmatpush.msra.mxu2 %v74_v24  ;;  %1372 = vmatpush.msra.mxu3 %v74_v24  ;;  %v308_v24 = vadd.s32 40, %v1686_v53 }
  0x26   :  { %1380 = vset.pattern.permute.xlu2 %v1504_v1  ;;  %106 = vmatmul.f32.vlgmr.msra.gmra.mxu0 %v58_v25  ;;  %v307_v1 = vadd.s32 32, %v1686_v53 }
  0x27   :  { %118 = vmatmul.f32.vlgmr.msra.gmra.mxu1 %v62_v26  ;;  %130 = vmatmul.f32.vlgmr.msra.gmra.mxu2 %v66_v27  ;;  %v316_v27 = vadd.s32 104, %v1686_v53 }
  0x28   :  { %142 = vmatmul.f32.vlgmr.msra.gmra.mxu3 %v70_v28  ;;  %185 = vperm.xlu2 %1380, %v159_v29   ;;  %vm341_vm7 = vcmp.ne.s32.totalorder %v307_v1, %v1688_v54 }
  0x29   :  { %212 = vperm.xlu1 %1379, %v168_v30   ;;  %209 = vperm.xlu0 %1378, %v167_v31   ;;  %vm1745_vm12 = vmand %vm336_vm2, %vm341_vm7 }
  0x2e   :  { %109 = vmatmul.f32.gmra.mxu0 %v59_v32 }
  0x2f   :  { %121 = vmatmul.f32.gmra.mxu1 %v63_v33  ;;  %133 = vmatmul.f32.gmra.mxu2 %v67_v34 }
  0x30   :  { %145 = vmatmul.f32.gmra.mxu3 %v71_v35  ;;  %188 = vperm.xlu2 %1380, %v160_v36  }
  0x31   :  { %218 = vperm.xlu0 %1378, %v170_v37  }
  0x36   :  { %112 = vmatmul.f32.gmra.mxu0 %v60_v38 }
  0x37   :  { %124 = vmatmul.f32.gmra.mxu1 %v64_v39  ;;  %136 = vmatmul.f32.gmra.mxu2 %v68_v40  ;;  %v305_v40 = vadd.s32 16, %v1686_v53 }
  0x38   :  { %148 = vmatmul.f32.gmra.mxu3 %v72_v41  ;;  %197 = vperm.xlu2 %1380, %v163_v42  }
  0x3e   :  { %115 = vmatmul.f32.gmra.mxu0 %v61_v43 }
  0x3f   :  { %127 = vmatmul.f32.gmra.mxu1 %v65_v44  ;;  %139 = vmatmul.f32.gmra.mxu2 %v69_v45 }
  0x40   :  { %151 = vmatmul.f32.gmra.mxu3 %v73_v46  ;;  %206 = vperm.xlu2 %1380, %v166_v47  }
  0x48   :  { %215 = vperm.xlu2 %1380, %v169_v48  }
  0x76   :  { %v174_v49 = vpop.permute.xlu0 %173  ;;  %v1692_v57 = vpop.permute.xlu1 %179 }
  0x77   :  { %vm221_vm9 = vcmp.eq.s32.totalorder %v174_v49, %v1721_v2 }
  0x78   :  { %vm468_vm13 = vmand %vm221_vm9, %vm1738_vm10 }
  0x79   :  { %vm1771_vm9 = vmand %vm336_vm2, %vm338_vm15 }
  0x7f   :  { %v177_v50 = vpop.permute.xlu0 %176  ;;  %v1700_v60 = vpop.permute.xlu1 %182 }
  0x80   :  { %vm222_vm7 = vcmp.eq.s32.totalorder %v177_v50, %v1721_v2 }
  0x81   :  { %vm1792_vm15 = vmand %vm222_vm7, %vm1771_vm9  ;;  %vm342_vm7 = vcmp.ne.s32.totalorder %v308_v24, %v1688_v54  ;;  %v306_v24 = vadd.s32 24, %v1686_v53 }
  0x82   :  { %v186_v52 = vpop.permute.xlu2 %185 }
  0x83   :  { %vm225_vm11 = vcmp.eq.s32.totalorder %v186_v52, %v1721_v2 }
  0x84   :  { %vm472_vm14 = vmand %vm225_vm11, %vm1745_vm12 }
  0x88   :  { %v1696_v58 = vpop.permute.xlu0 %191  ;;  %v1723_v3 = vpop.permute.xlu1 %194 }
  0x8a   :  { %v1698_v59 = vpop.permute.xlu2 %188 }
  0x91   :  { %v1702_v61 = vpop.permute.xlu0 %200  ;;  %v1757_v14 = vpop.permute.xlu1 %203 }
  0x92   :  { %v198_v62 = vpop.permute.xlu2 %197 }
  0x93   :  { %vm229_vm11 = vcmp.eq.s32.totalorder %v198_v62, %v1721_v2 }
  0x9a   :  { %v207_v4 = vpop.permute.xlu2 %206 }
  0x9b   :  { %vm232_vm5 = vcmp.eq.s32.totalorder %v207_v4, %v1721_v2  ;;  %v210_v5 = vpop.permute.xlu0 %209  ;;  %v213_v35 = vpop.permute.xlu1 %212 }
  0x9c   :  { %vm1731_vm8 = vmand %vm232_vm5, %vm1713_vm4  ;;  %vm349_vm5 = vcmp.ne.s32.totalorder %v315_v11, %v1688_v54 }
  0xa3   :  { %v219_v12 = vpop.permute.xlu0 %218  ;;  %v107_v13 = vpop.f32.mrf.mxu0 }
  0xa4   :  { %vm236_vm0 = vcmp.eq.s32.totalorder %v219_v12, %v1721_v2  ;;  %v1309_v15 = vadd.f32 -14.285714, %v107_v13  ;;  %v119_v16 = vpop.f32.mrf.mxu1  ;;  %v500_v17 = vsel %vm468_vm13, %v107_v13, 0.0  ;;  %vm1778_vm13 = vmand %vm336_vm2, %vm345_vm1  ;;  %v309_v12 = vadd.s32 48, %v1686_v53 }
  0xa5   :  { %v504_v18 = vsel %vm472_vm14, %v119_v16, 0.0  ;;  %516 = vadd.xlane.f32.xlu1 %v500_v17  ;;  %vm1764_vm6 = vmand %vm236_vm0, %vm1707_vm3  ;;  %vm233_vm14 = vcmp.eq.s32.totalorder %v210_v5, %v1721_v2  ;;  %v1313_v28 = vadd.f32 -14.285714, %v119_v16 }
  0xa6   :  { %524 = vadd.xlane.f32.xlu2 %v504_v18  ;;  %v253_v21 = vmul.f32 1.442695, %v1309_v15  ;;  %vm1785_vm0 = vmand %vm336_vm2, %vm349_vm5 }
  0xa7   :  { %vm476_vm1 = vmand %vm229_vm11, %vm1778_vm13  ;;  %vm350_vm11 = vcmp.ne.s32.totalorder %v316_v27, %v1688_v54  ;;  %v261_v37 = vmul.f32 1.442695, %v1313_v28  ;;  %v313_v27 = vadd.s32 80, %v1686_v53 }
  0xa8   :  { %1382 = vpow2.f32 %v253_v21  ;;  %vm480_vm5 = vmand %vm233_vm14, %vm1785_vm0 }
  0xa9   :  { %vm1809_vm14 = vmand %vm336_vm2, %vm342_vm7 }
  0xaa   :  { %v131_v26 = vpop.f32.mrf.mxu2 }
  0xab   :  { %v1317_v29 = vadd.f32 -14.285714, %v131_v26  ;;  %v143_v30 = vpop.f32.mrf.mxu3  ;;  %v508_v31 = vsel %vm476_vm1, %v131_v26, 0.0  ;;  %v110_v32 = vpop.f32.mrf.mxu0  ;;  %vm226_vm1 = vcmp.eq.s32.totalorder %v1698_v59, %v1721_v2  ;;  %v312_v59 = vadd.s32 72, %v1686_v53 }
  0xac   :  { %532 = vadd.xlane.f32.xlu0 %v508_v31  ;;  %v512_v33 = vsel %vm480_vm5, %v143_v30, 0.0  ;;  %v501_v34 = vsel %vm1792_vm15, %v110_v32, 0.0  ;;  %v122_v39 = vpop.f32.mrf.mxu1  ;;  %vm234_vm15 = vcmp.eq.s32.totalorder %v213_v35, %v1721_v2  ;;  %vm1817_vm5 = vmand %vm336_vm2, %vm350_vm11  ;;  %v1321_v43 = vadd.f32 -14.285714, %v143_v30 }
  0xad   :  { %540 = vadd.xlane.f32.xlu1 %v512_v33  ;;  %v269_v36 = vmul.f32 1.442695, %v1317_v29  ;;  %vm473_vm7 = vmand %vm226_vm1, %vm1809_vm14  ;;  %v1310_v46 = vadd.f32 -14.285714, %v110_v32  ;;  %vm339_vm11 = vcmp.ne.s32.totalorder %v305_v40, %v1688_v54  ;;  %vm223_vm1 = vcmp.eq.s32.totalorder %v1692_v57, %v1721_v2 }
  0xae   :  { %518 = vadd.xlane.f32.xlu2 %v501_v34  ;;  %v1383_v41 = vpop.eup %1382  ;;  %v505_v45 = vsel %vm473_vm7, %v122_v39, 0.0  ;;  %vm481_vm4 = vmand %vm234_vm15, %vm1817_vm5  ;;  %v277_v49 = vmul.f32 1.442695, %v1321_v43  ;;  %v1314_v1 = vadd.f32 -14.285714, %v122_v39  ;;  %vm230_vm15 = vcmp.eq.s32.totalorder %v1702_v61, %v1721_v2  ;;  %v216_v61 = vpop.permute.xlu2 %215 }
  0xaf   :  { %1384 = vpow2.f32 %v269_v36  ;;  %v387_v47 = vsel %vm1738_vm10, %v1383_v41, 0.0  ;;  %vm1832_vm7 = vmand %vm336_vm2, %vm339_vm11  ;;  %v255_v52 = vmul.f32 1.442695, %v1310_v46  ;;  %vm346_vm10 = vcmp.ne.s32.totalorder %v312_v59, %v1688_v54 }
  0xb0   :  { %1386 = vpow2.f32 %v261_v37  ;;  %v263_v9 = vmul.f32 1.442695, %v1314_v1  ;;  %vm351_vm11 = vcmp.ne.s32.totalorder %v317_v8, %v1688_v54  ;;  %v310_v39 = vadd.s32 56, %v1686_v53 }
  0xb1   :  { %1388 = vpow2.f32 %v277_v49 }
  0xb2   :  { %1390 = vpow2.f32 %v255_v52  ;;  %v134_v5 = vpop.f32.mrf.mxu2 }
  0xb3   :  { %v146_v44 = vpop.f32.mrf.mxu3  ;;  %v113_v55 = vpop.f32.mrf.mxu0  ;;  %v1318_v10 = vadd.f32 -14.285714, %v134_v5  ;;  %1392 = vpow2.f32 %v263_v9 }
  0xb4   :  { %526 = vadd.xlane.f32.xlu0 %v505_v45  ;;  %v513_v48 = vsel %vm481_vm4, %v146_v44, 0.0  ;;  %vm470_vm4 = vmand %vm223_vm1, %vm1832_vm7  ;;  %vm343_vm1 = vcmp.ne.s32.totalorder %v309_v12, %v1688_v54  ;;  %v125_v23 = vpop.f32.mrf.mxu1  ;;  %v1311_v26 = vadd.f32 -14.285714, %v113_v55  ;;  %v1322_v28 = vadd.f32 -14.285714, %v146_v44 }
  0xb5   :  { %403 = vadd.xlane.f32.xlu1 %v387_v47  ;;  %v1385_v51 = vpop.eup %1384  ;;  %v502_v62 = vsel %vm470_vm4, %v113_v55, 0.0  ;;  %v271_v16 = vmul.f32 1.442695, %v1318_v10  ;;  %vm235_vm4 = vcmp.eq.s32.totalorder %v216_v61, %v1721_v2 }
  0xb6   :  { %542 = vadd.xlane.f32.xlu2 %v513_v48  ;;  %v1387_v56 = vpop.eup %1386  ;;  %v395_v57 = vsel %vm1778_vm13, %v1385_v51, 0.0  ;;  %vm1848_vm13 = vmand %vm336_vm2, %vm346_vm10  ;;  %vm227_vm10 = vcmp.eq.s32.totalorder %v1696_v58, %v1721_v2  ;;  %v257_v32 = vmul.f32 1.442695, %v1311_v26  ;;  %v279_v33 = vmul.f32 1.442695, %v1322_v28  ;;  %v1995_v28 = vld [vmem:[%s2680_s4 + $0x20] sm:$0xff] }
  0xb7   :  { %v391_v4 = vsel %vm1745_vm12, %v1387_v56, 0.0  ;;  %v1389_v7 = vpop.eup %1388  ;;  %vm477_vm12 = vmand %vm230_vm15, %vm1848_vm13  ;;  %1394 = vpow2.f32 %v271_v16 }
  0xb8   :  { %v1391_v13 = vpop.eup %1390  ;;  %v399_v15 = vsel %vm1785_vm0, %v1389_v7, 0.0  ;;  %v509_v17 = vsel %vm477_vm12, %v134_v5, 0.0  ;;  %vm1865_vm0 = vmand %vm336_vm2, %vm351_vm11  ;;  %vm340_vm11 = vcmp.ne.s32.totalorder %v306_v24, %v1688_v54  ;;  %1396 = vpow2.f32 %v257_v32 }
  0xb9   :  { %v388_v18 = vsel %vm1771_vm9, %v1391_v13, 0.0  ;;  %vm1873_vm15 = vmand %vm336_vm2, %vm343_vm1  ;;  %v1393_v25 = vpop.eup %1392  ;;  %vm347_vm1 = vcmp.ne.s32.totalorder %v313_v27, %v1688_v54  ;;  %1398 = vpow2.f32 %v279_v33  ;;  %v1988_v27 = vld [vmem:[%s2680_s4 + $0x40] sm:$0xff] }
  0xba   :  { %vm482_vm9 = vmand %vm235_vm4, %vm1865_vm0  ;;  %v392_v30 = vsel %vm1809_vm14, %v1393_v25, 0.0  ;;  %vm224_vm4 = vcmp.eq.s32.totalorder %v1700_v60, %v1721_v2  ;;  %vm231_vm14 = vcmp.eq.s32.totalorder %v1757_v14, %v1721_v2  ;;  %v1315_v60 = vadd.f32 -14.285714, %v125_v23  ;;  %v137_v38 = vpop.f32.mrf.mxu2 }
  0xbb   :  { %v149_v22 = vpop.f32.mrf.mxu3  ;;  %vm474_vm12 = vmand %vm227_vm10, %vm1873_vm15  ;;  %v116_v35 = vpop.f32.mrf.mxu0  ;;  %v1319_v49 = vadd.f32 -14.285714, %v137_v38 }
  0xbc   :  { %520 = vadd.xlane.f32.xlu0 %v502_v62  ;;  %v514_v58 = vsel %vm482_vm9, %v149_v22, 0.0  ;;  %v506_v29 = vsel %vm474_vm12, %v125_v23, 0.0  ;;  %vm1891_vm10 = vmand %vm336_vm2, %vm340_vm11  ;;  %v1323_v14 = vadd.f32 -14.285714, %v149_v22  ;;  %v265_v43 = vmul.f32 1.442695, %v1315_v60  ;;  %v128_v47 = vpop.f32.mrf.mxu1 }
  0xbd   :  { %411 = vadd.xlane.f32.xlu1 %v391_v4  ;;  %v1395_v31 = vpop.eup %1394  ;;  %vm1901_vm9 = vmand %vm336_vm2, %vm347_vm1  ;;  %vm344_vm11 = vcmp.ne.s32.totalorder %v310_v39, %v1688_v54  ;;  %vm228_vm1 = vcmp.eq.s32.totalorder %v1723_v3, %v1721_v2  ;;  %v1312_v48 = vadd.f32 -14.285714, %v116_v35  ;;  %v273_v52 = vmul.f32 1.442695, %v1319_v49  ;;  %v2014_v60 = vld [vmem:[%s2680_s4 + $0x60] sm:$0xff] }
  0xbe   :  { %419 = vadd.xlane.f32.xlu2 %v395_v57  ;;  %v396_v36 = vsel %vm1848_vm13, %v1395_v31, 0.0  ;;  %vm471_vm12 = vmand %vm224_vm4, %vm1891_vm10  ;;  %v1397_v44 = vpop.eup %1396  ;;  %v281_v45 = vmul.f32 1.442695, %v1323_v14  ;;  %1400 = vpow2.f32 %v265_v43  ;;  %v1316_v1 = vadd.f32 -14.285714, %v128_v47 }
  0xbf   :  { %vm478_vm13 = vmand %vm231_vm14, %vm1901_vm9  ;;  %v503_v40 = vsel %vm471_vm12, %v116_v35, 0.0  ;;  %v1399_v46 = vpop.eup %1398  ;;  %v389_v51 = vsel %vm1832_vm7, %v1397_v44, 0.0  ;;  %v259_v3 = vmul.f32 1.442695, %v1312_v48  ;;  %vm919_vm7 = vcmp.eq.f32.partialorder %v2014_v60, 0.0  ;;  %v2027_v44 = vld [vmem:[%s2680_s4 + $0x8] sm:$0xff] }
  0xc0   :  { %v510_v41 = vsel %vm478_vm13, %v137_v38, 0.0  ;;  %vm1915_vm4 = vmand %vm336_vm2, %vm344_vm11  ;;  %1402 = vpow2.f32 %v281_v45  ;;  %v400_v2 = vsel %vm1817_vm5, %v1399_v46, 0.0  ;;  %v267_v10 = vmul.f32 1.442695, %v1316_v1 }
  0xc1   :  { %vm475_vm14 = vmand %vm228_vm1, %vm1915_vm4  ;;  %1404 = vpow2.f32 %v259_v3  ;;  %vm25_vm2 = vcmask 7168   ;;  %vm911_vm5 = vcmp.eq.f32.partialorder %v1995_v28, 0.0  ;;  %v2022_v43 = vsel %vm919_vm7, 1.0, %v2014_v60 }
  0xc2   :  { %v507_v54 = vsel %vm475_vm14, %v128_v47, 0.0  ;;  %v140_v62 = vpop.f32.mrf.mxu2  ;;  %1406 = vpow2.f32 %v273_v52  ;;  %v2006_v31 = vsel %vm911_vm5, 1.0, %v1995_v28 }
  0xc3   :  { %v152_v55 = vpop.f32.mrf.mxu3  ;;  %v1320_v50 = vadd.f32 -14.285714, %v140_v62  ;;  %v511_v12 = vsel %vm1731_vm8, %v140_v62, 0.0  ;;  %vm915_vm8 = vcmp.eq.f32.partialorder %v1988_v27, 0.0 }
  0xc4   :  { %427 = vadd.xlane.f32.xlu0 %v399_v15  ;;  %v1401_v56 = vpop.eup %1400  ;;  %v1324_v59 = vadd.f32 -14.285714, %v152_v55  ;;  %v515_v42 = vsel %vm1764_vm6, %v152_v55, 0.0  ;;  %vm2721_vm6 = vnez %v2686_v0 }
  0xc5   :  { %534 = vadd.xlane.f32.xlu1 %v509_v17  ;;  %v393_v4 = vsel %vm1873_vm15, %v1401_v56, 0.0  ;;  %v275_v9 = vmul.f32 1.442695, %v1320_v50 }
  0xc6   :  { %405 = vadd.xlane.f32.xlu2 %v388_v18  ;;  %v1403_v57 = vpop.eup %1402  ;;  %v283_v5 = vmul.f32 1.442695, %v1324_v59  ;;  %v1505_v18 = vmov 0.0  }
  0xc7   :  { %v401_v7 = vsel %vm1865_vm0, %v1403_v57, 0.0  ;;  %v1405_v11 = vpop.eup %1404  ;;  %46 = vst.msk [vmem:[#allocation3 + $0x20] sm:$0xff] %vm25_vm2, %v1505_v18  ;;  %vm908_vm0 = vcmp.eq.f32.partialorder %v2027_v44, 0.0 }
  0xc8   :  { %1408 = vpow2.f32 %v283_v5  ;;  %v1407_v8 = vpop.eup %1406  ;;  %v390_v13 = vsel %vm1891_vm10, %v1405_v11, 0.0  ;;  %26 = vst.msk [vmem:[#allocation2] sm:$0xff] %vm25_vm2, %v1505_v18  ;;  %v2035_v53 = vsel %vm908_vm0, 1.0, %v2027_v44  ;;  %vm1124_vm0 = vweird.f32 %v2022_v43 }
  0xc9   :  { %1410 = vpow2.f32 %v275_v9  ;;  %v397_v19 = vsel %vm1901_vm9, %v1407_v8, 0.0  ;;  %27 = vst.msk [vmem:[#allocation2 + $0x8] sm:$0xff] %vm25_vm2, %v1505_v18 }
  0xca   :  { %1412 = vpow2.f32 %v267_v10  ;;  %28 = vst.msk [vmem:[#allocation2 + $0x10] sm:$0xff] %vm25_vm2, %v1505_v18 }
  0xcb   :  { %29 = vst.msk [vmem:[#allocation2 + $0x18] sm:$0xff] %vm25_vm2, %v1505_v18 }
  0xcc   :  { %544 = vadd.xlane.f32.xlu0 %v514_v58  ;;  %30 = vst.msk [vmem:[#allocation2 + $0x20] sm:$0xff] %vm25_vm2, %v1505_v18 }
  0xcd   :  { %528 = vadd.xlane.f32.xlu1 %v506_v29  ;;  %31 = vst.msk [vmem:[#allocation2 + $0x28] sm:$0xff] %vm25_vm2, %v1505_v18  ;;  %v2001_v29 = vsel %vm915_vm8, 1.0, %v1988_v27 }
  0xce   :  { %413 = vadd.xlane.f32.xlu2 %v392_v30  ;;  %v1409_v15 = vpop.eup %1408  ;;  %32 = vst.msk [vmem:[#allocation2 + $0x30] sm:$0xff] %vm25_vm2, %v1505_v18  ;;  %v488_v20 = vld [vmem:[#allocation3 + $0x20] sm:$0xff]  ;;  %vm1064_vm11 = vweird.f32 %v2001_v29 }
  0xcf   :  { %v1411_v61 = vpop.eup %1410  ;;  %v402_v17 = vsel %vm1707_vm3, %v1409_v15, 0.0  ;;  %33 = vst.msk [vmem:[#allocation2 + $0x38] sm:$0xff] %vm25_vm2, %v1505_v18  ;;  %vm907_vm3 = vcmp.eq.f32.partialorder %v1978_v63, 0.0  ;;  %v371_v47 = vld [vmem:[#allocation2] sm:$0xff] }
  0xd0   :  { %v1413_v16 = vpop.eup %1412  ;;  %v398_v6 = vsel %vm2721_vm6, %v1411_v61, 0.0  ;;  %34 = vst.msk [vmem:[#allocation2 + $0x40] sm:$0xff] %vm25_vm2, %v1505_v18  ;;  %v1982_v0 = vsel %vm907_vm3, 1.0, %v1978_v63 }
  0xd1   :  { %v394_v21 = vsel %vm1915_vm4, %v1413_v16, 0.0  ;;  %35 = vst.msk [vmem:[#allocation2 + $0x48] sm:$0xff] %vm25_vm2, %v1505_v18  ;;  %1414 = vrcp.f32 %v1982_v0  ;;  %vm944_vm15 = vweird.f32 %v1982_v0  ;;  %v950_v62 = vand.u32 2147483648, %v1982_v0 }
  0xd2   :  { %36 = vst.msk [vmem:[#allocation2 + $0x50] sm:$0xff] %vm25_vm2, %v1505_v18  ;;  %1416 = vrcp.f32 %v2001_v29  ;;  %vm1004_vm4 = vweird.f32 %v2006_v31 }
  0xd3   :  { %37 = vst.msk [vmem:[#allocation2 + $0x58] sm:$0xff] %vm25_vm2, %v1505_v18  ;;  %1418 = vrcp.f32 %v2006_v31  ;;  %v375_v11 = vld [vmem:[#allocation2 + $0x20] sm:$0xff]  ;;  %v951_v8 = vor.u32 1.1754944e-38, %v950_v62 }
  0xd4   :  { %421 = vadd.xlane.f32.xlu0 %v396_v36  ;;  %38 = vst.msk [vmem:[#allocation2 + $0x60] sm:$0xff] %vm25_vm2, %v1505_v18  ;;  %1420 = vrcp.f32 %v2022_v43 }
  0xd5   :  { %522 = vadd.xlane.f32.xlu1 %v503_v40  ;;  %39 = vst.msk [vmem:[#allocation2 + $0x68] sm:$0xff] %vm25_vm2, %v1505_v18  ;;  %1422 = vrcp.f32 %v2035_v53 }
  0xd6   :  { %536 = vadd.xlane.f32.xlu2 %v510_v41  ;;  %40 = vst.msk [vmem:[#allocation2 + $0x70] sm:$0xff] %vm25_vm2, %v1505_v18 }
  0xd7   :  { %41 = vst.msk [vmem:[#allocation2 + $0x78] sm:$0xff] %vm25_vm2, %v1505_v18  ;;  %v1997_v58 = vpop.eup %1414  ;;  %v379_v15 = vld [vmem:[#allocation2 + $0x40] sm:$0xff] }
  0xd8   :  { %42 = vst.msk [vmem:[#allocation3] sm:$0xff] %vm25_vm2, %v1505_v18  ;;  %v940_v35 = vmul.f32 %v1997_v58, %v1982_v0  ;;  %v2018_v40 = vpop.eup %1416  ;;  %vm945_vm10 = vweird.f32 %v1997_v58 }
  0xd9   :  { %43 = vst.msk [vmem:[#allocation3 + $0x8] sm:$0xff] %vm25_vm2, %v1505_v18  ;;  %v2029_v45 = vpop.eup %1418  ;;  %v1060_v48 = vmul.f32 %v2018_v40, %v2001_v29  ;;  %vm2060_vm9 = vmor %vm944_vm15, %vm945_vm10  ;;  %vm1065_vm1 = vweird.f32 %v2018_v40  ;;  %vm959_vm10 = vweird.f32 %v2035_v53 }
  0xda   :  { %44 = vst.msk [vmem:[#allocation3 + $0x10] sm:$0xff] %vm25_vm2, %v1505_v18  ;;  %v941_v41 = vsub.f32 1.0, %v940_v35  ;;  %v2047_v50 = vpop.eup %1420  ;;  %vm1005_vm14 = vweird.f32 %v2029_v45  ;;  %vm2101_vm6 = vmor %vm1064_vm11, %vm1065_vm1  ;;  %v1068_v35 = vand.u32 2147483647, %v2001_v29 }
  0xdb   :  { %45 = vst.msk [vmem:[#allocation3 + $0x18] sm:$0xff] %vm25_vm2, %v1505_v18  ;;  %v1061_v57 = vsub.f32 1.0, %v1060_v48  ;;  %vm2112_vm3 = vmor %vm1004_vm4, %vm1005_vm14  ;;  %vm1125_vm15 = vweird.f32 %v2047_v50 }
  0xdc   :  { %407 = vadd.xlane.f32.xlu0 %v389_v51  ;;  %47 = vst.msk [vmem:[#allocation3 + $0x28] sm:$0xff] %vm25_vm2, %v1505_v18  ;;  %vm2130_vm5 = vcmp.eq.f32.partialorder %v1068_v35, 8.507059e+37 }
  0xdd   :  { %429 = vadd.xlane.f32.xlu1 %v400_v2  ;;  %48 = vst.msk [vmem:[#allocation3 + $0x30] sm:$0xff] %vm25_vm2, %v1505_v18  ;;  %v942_v2 = vmul.f32 %v1997_v58, %v941_v41 }
  0xde   :  { %530 = vadd.xlane.f32.xlu2 %v507_v54  ;;  %49 = vst.msk [vmem:[#allocation3 + $0x38] sm:$0xff] %vm25_vm2, %v1505_v18  ;;  %v1000_v54 = vmul.f32 %v2029_v45, %v2006_v31 }
  0xdf   :  { %50 = vst.msk [vmem:[#allocation3 + $0x40] sm:$0xff] %vm25_vm2, %v1505_v18  ;;  %v484_v22 = vld [vmem:[#allocation3] sm:$0xff]  ;;  %v943_v1 = vadd.f32 %v1997_v58, %v942_v2  ;;  %v372_v2 = vld [vmem:[#allocation2 + $0x8] sm:$0xff] }
  0xe0   :  { %51 = vst.msk [vmem:[#allocation3 + $0x48] sm:$0xff] %vm25_vm2, %v1505_v18  ;;  %v485_v34 = vld [vmem:[#allocation3 + $0x8] sm:$0xff]  ;;  %v1001_v5 = vsub.f32 1.0, %v1000_v54 }
  0xe1   :  { %52 = vst.msk [vmem:[#allocation3 + $0x50] sm:$0xff] %vm25_vm2, %v1505_v18  ;;  %v486_v10 = vld [vmem:[#allocation3 + $0x10] sm:$0xff]  ;;  %v947_v61 = vsel %vm2060_vm9, %v1997_v58, %v943_v1 }
  0xe2   :  { %53 = vst.msk [vmem:[#allocation3 + $0x58] sm:$0xff] %vm25_vm2, %v1505_v18 }
  0xe3   :  { %54 = vst.msk [vmem:[#allocation3 + $0x60] sm:$0xff] %vm25_vm2, %v1505_v18  ;;  %v489_v46 = vld [vmem:[#allocation3 + $0x28] sm:$0xff] }
  0xe4   :  { %415 = vadd.xlane.f32.xlu0 %v393_v4  ;;  %55 = vst.msk [vmem:[#allocation3 + $0x68] sm:$0xff] %vm25_vm2, %v1505_v18  ;;  %v948_v4 = vand.u32 2147483647, %v1982_v0  ;;  %v1070_v0 = vand.u32 2147483648, %v2001_v29  ;;  %v383_v29 = vld [vmem:[#allocation2 + $0x60] sm:$0xff] }
  0xe5   :  { %546 = vadd.xlane.f32.xlu1 %v515_v42  ;;  %56 = vst.msk [vmem:[#allocation3 + $0x70] sm:$0xff] %vm25_vm2, %v1505_v18  ;;  %v2055_v42 = vld [vmem:[%s2680_s4 + $0x28] sm:$0xff] }
  0xe6   :  { %431 = vadd.xlane.f32.xlu2 %v401_v7  ;;  %57 = vst.msk [vmem:[#allocation3 + $0x78] sm:$0xff] %vm25_vm2, %v1505_v18  ;;  %v492_v30 = vld [vmem:[#allocation3 + $0x40] sm:$0xff]  ;;  %v2057_v7 = vpop.eup %1422  ;;  %vm912_vm12 = vcmp.eq.f32.partialorder %v2055_v42, 0.0  ;;  %vm2071_vm13 = vcmp.eq.f32.partialorder %v948_v4, 8.507059e+37  ;;  %v1071_v41 = vor.u32 1.1754944e-38, %v1070_v0 }
  0xe7   :  { %vm960_vm9 = vweird.f32 %v2057_v7 }
  0xe8   :  { %vm2185_vm11 = vmor %vm959_vm10, %vm960_vm9 }
  0xea   :  { %v496_v32 = vld [vmem:[#allocation3 + $0x60] sm:$0xff] }
  0xeb   :  { %v497_v51 = vld [vmem:[#allocation3 + $0x68] sm:$0xff] }
  0xec   :  { %538 = vadd.xlane.f32.xlu0 %v511_v12  ;;  %v1062_v12 = vmul.f32 %v2018_v40, %v1061_v57  ;;  %v1130_v57 = vand.u32 2147483648, %v2022_v43  ;;  %v498_v0 = vld [vmem:[#allocation3 + $0x70] sm:$0xff] }
  0xed   :  { %423 = vadd.xlane.f32.xlu1 %v397_v19 }
  0xee   :  { %409 = vadd.xlane.f32.xlu2 %v390_v13  ;;  %v1120_v13 = vmul.f32 %v2047_v50, %v2022_v43  ;;  %v1063_v58 = vadd.f32 %v2018_v40, %v1062_v12 }
  0xf4   :  { %433 = vadd.xlane.f32.xlu0 %v402_v17  ;;  %v1002_v17 = vmul.f32 %v2029_v45, %v1001_v5 }
  0xf5   :  { %417 = vadd.xlane.f32.xlu1 %v394_v21 }
  0xf6   :  { %425 = vadd.xlane.f32.xlu2 %v398_v6  ;;  %v955_v6 = vmul.f32 %v2057_v7, %v2035_v53 }
 0x118   :  { %v517_v23 = vpop.xlane.xlu1 %516 }
 0x119   :  { %v525_v24 = vpop.xlane.xlu2 %524  ;;  %v548_v25 = vadd.f32 %v517_v23, %v484_v22  ;;  %v2086_v23 = vsel %vm912_vm12, 1.0, %v2055_v42 }
 0x11a   :  { %v552_v26 = vadd.f32 %v525_v24, %v488_v20  ;;  %v2091_v24 = vld [vmem:[%s2680_s4 + $0x48] sm:$0xff]  ;;  %1424 = vrcp.f32 %v2086_v23  ;;  %vm1019_vm14 = vweird.f32 %v2086_v23 }
 0x11b   :  { %564 = vst.msk [vmem:[#allocation3] sm:$0xff] %vm25_vm2, %v548_v25  ;;  %vm916_vm8 = vcmp.eq.f32.partialorder %v2091_v24, 0.0 }
 0x11c   :  { %568 = vst.msk [vmem:[#allocation3 + $0x20] sm:$0xff] %vm25_vm2, %v552_v26 }
 0x11f   :  { %v533_v33 = vpop.xlane.xlu0 %532 }
 0x120   :  { %v556_v36 = vadd.f32 %v533_v33, %v492_v30  ;;  %v541_v37 = vpop.xlane.xlu1 %540  ;;  %v1010_v30 = vand.u32 2147483648, %v2006_v31  ;;  %v2153_v1 = vpop.eup %1424 }
 0x121   :  { %v560_v38 = vadd.f32 %v541_v37, %v496_v32  ;;  %v519_v39 = vpop.xlane.xlu2 %518  ;;  %v1121_v32 = vsub.f32 1.0, %v1120_v13  ;;  %v956_v37 = vsub.f32 1.0, %v955_v6 }
 0x122   :  { %572 = vst.msk [vmem:[#allocation3 + $0x40] sm:$0xff] %vm25_vm2, %v556_v36  ;;  %v549_v14 = vadd.f32 %v519_v39, %v485_v34  ;;  %v1003_v36 = vadd.f32 %v2029_v45, %v1002_v17  ;;  %v1008_v39 = vand.u32 2147483647, %v2006_v31  ;;  %v1011_v48 = vor.u32 1.1754944e-38, %v1010_v30 }
 0x123   :  { %576 = vst.msk [vmem:[#allocation3 + $0x60] sm:$0xff] %vm25_vm2, %v560_v38  ;;  %v2128_v31 = vsel %vm916_vm8, 1.0, %v2091_v24  ;;  %v2201_v30 = vor.u32 1.1754944e-38, %v1130_v57 }
 0x124   :  { %565 = vst.msk [vmem:[#allocation3 + $0x8] sm:$0xff] %vm25_vm2, %v549_v14  ;;  %v2121_v14 = vsel %vm2071_vm13, %v951_v8, %v947_v61  ;;  %vm2139_vm7 = vcmp.eq.f32.partialorder %v1008_v39, 8.507059e+37  ;;  %vm2166_vm13 = vmor %vm1124_vm0, %vm1125_vm15  ;;  %v1015_v61 = vmul.f32 %v2153_v1, %v2086_v23 }
 0x127   :  { %v527_v49 = vpop.xlane.xlu0 %526 }
 0x128   :  { %v553_v3 = vadd.f32 %v527_v49, %v489_v46  ;;  %v404_v52 = vpop.xlane.xlu1 %403  ;;  %v493_v46 = vld [vmem:[#allocation3 + $0x48] sm:$0xff]  ;;  %v1122_v49 = vmul.f32 %v2047_v50, %v1121_v32 }
 0x129   :  { %v435_v55 = vadd.f32 %v404_v52, %v371_v47  ;;  %v543_v56 = vpop.xlane.xlu2 %542  ;;  %v1067_v47 = vsel %vm2101_vm6, %v2018_v40, %v1063_v58  ;;  %v957_v52 = vmul.f32 %v2057_v7, %v956_v37  ;;  %v1025_v37 = vand.u32 2147483648, %v2086_v23 }
 0x12a   :  { %569 = vst.msk [vmem:[#allocation3 + $0x28] sm:$0xff] %vm25_vm2, %v553_v3  ;;  %v561_v59 = vadd.f32 %v543_v56, %v497_v51  ;;  %v1007_v3 = vsel %vm2112_vm3, %v2029_v45, %v1003_v36  ;;  %v2157_v9 = vadd.f32 %v2047_v50, %v1122_v49  ;;  %v2179_v6 = vsel %vm2130_vm5, %v1071_v41, %v1067_v47  ;;  %v2229_v47 = vld [vmem:[%s2680_s4 + $0x30] sm:$0xff] }
 0x12b   :  { %452 = vst.msk [vmem:[#allocation2] sm:$0xff] %vm25_vm2, %v435_v55  ;;  %vm1020_vm6 = vweird.f32 %v2153_v1  ;;  %vm1079_vm3 = vweird.f32 %v2128_v31  ;;  %vm913_vm8 = vcmp.eq.f32.partialorder %v2229_v47, 0.0 }
 0x12c   :  { %577 = vst.msk [vmem:[#allocation3 + $0x68] sm:$0xff] %vm25_vm2, %v561_v59  ;;  %v2148_v59 = vld [vmem:[%s2680_s4 + $0x10] sm:$0xff]  ;;  %v1127_v34 = vsel %vm2166_vm13, %v2047_v50, %v2157_v9  ;;  %vm2252_vm5 = vmor %vm1019_vm14, %vm1020_vm6 }
 0x12d   :  { %vm909_vm12 = vcmp.eq.f32.partialorder %v2148_v59, 0.0 }
 0x12f   :  { %v521_v19 = vpop.xlane.xlu0 %520 }
 0x130   :  { %v550_v18 = vadd.f32 %v521_v19, %v486_v10  ;;  %v412_v21 = vpop.xlane.xlu1 %411  ;;  %v1128_v10 = vand.u32 2147483647, %v2022_v43  ;;  %v2171_v19 = vadd.f32 %v2057_v7, %v957_v52 }
 0x131   :  { %v439_v22 = vadd.f32 %v412_v21, %v375_v11  ;;  %v420_v20 = vpop.xlane.xlu2 %419 }
 0x132   :  { %566 = vst.msk [vmem:[#allocation3 + $0x10] sm:$0xff] %vm25_vm2, %v550_v18  ;;  %v443_v25 = vadd.f32 %v420_v20, %v379_v15  ;;  %v779_v26 = vld [vmem:[#allocation2] sm:$0xff]  ;;  %v963_v15 = vand.u32 2147483647, %v2035_v53  ;;  %v965_v18 = vand.u32 2147483648, %v2035_v53  ;;  %v1016_v20 = vsub.f32 1.0, %v1015_v61 }
 0x133   :  { %456 = vst.msk [vmem:[#allocation2 + $0x20] sm:$0xff] %vm25_vm2, %v439_v22  ;;  %v795_v33 = vadd.f32 1e-06, %v779_v26  ;;  %v2194_v22 = vsel %vm2139_vm7, %v1011_v48, %v1007_v3  ;;  %v490_v26 = vld [vmem:[#allocation3 + $0x30] sm:$0xff]  ;;  %vm2209_vm1 = vcmp.eq.f32.partialorder %v1128_v10, 8.507059e+37  ;;  %v962_v36 = vsel %vm2185_vm11, %v2057_v7, %v2171_v19 }
 0x134   :  { %460 = vst.msk [vmem:[#allocation2 + $0x40] sm:$0xff] %vm25_vm2, %v443_v25  ;;  %v2199_v25 = vsel %vm909_vm12, 1.0, %v2148_v59  ;;  %vm2220_vm4 = vcmp.eq.f32.partialorder %v963_v15, 8.507059e+37  ;;  %v1017_v54 = vmul.f32 %v2153_v1, %v1016_v20 }
 0x135   :  { %1426 = vlog2.f32 %v795_v33  ;;  %v376_v33 = vld [vmem:[#allocation2 + $0x28] sm:$0xff]  ;;  %vm974_vm9 = vweird.f32 %v2199_v25 }
 0x136   :  { %1428 = vrcp.f32 %v2128_v31  ;;  %v1018_v15 = vadd.f32 %v2153_v1, %v1017_v54 }
 0x137   :  { %v428_v51 = vpop.xlane.xlu0 %427 }
 0x138   :  { %v447_v40 = vadd.f32 %v428_v51, %v383_v29  ;;  %v535_v55 = vpop.xlane.xlu1 %534  ;;  %v843_v51 = vld [vmem:[#allocation3] sm:$0xff] }
 0x139   :  { %v557_v45 = vadd.f32 %v535_v55, %v493_v46  ;;  %v406_v62 = vpop.xlane.xlu2 %405  ;;  %v2224_v46 = vor.u32 1.1754944e-38, %v965_v18  ;;  %v1023_v55 = vand.u32 2147483647, %v2086_v23 }
 0x13a   :  { %464 = vst.msk [vmem:[#allocation2 + $0x60] sm:$0xff] %vm25_vm2, %v447_v40  ;;  %v436_v4 = vadd.f32 %v406_v62, %v372_v2  ;;  %v783_v5 = vld [vmem:[#allocation2 + $0x20] sm:$0xff]  ;;  %v1026_v62 = vor.u32 1.1754944e-38, %v1025_v37 }
 0x13b   :  { %v1427_v11 = vpop.eup %1426  ;;  %573 = vst.msk [vmem:[#allocation3 + $0x48] sm:$0xff] %vm25_vm2, %v557_v45  ;;  %v787_v8 = vld [vmem:[#allocation2 + $0x40] sm:$0xff]  ;;  %v799_v12 = vadd.f32 1e-06, %v783_v5  ;;  %vm2262_vm0 = vcmp.eq.f32.partialorder %v1023_v55, 8.507059e+37 }
 0x13c   :  { %453 = vst.msk [vmem:[#allocation2 + $0x8] sm:$0xff] %vm25_vm2, %v436_v4  ;;  %v812_v16 = vmul.f32 0.6931472, %v1427_v11  ;;  %v803_v17 = vadd.f32 1e-06, %v787_v8  ;;  %v2190_v21 = vpop.eup %1428  ;;  %v380_v8 = vld [vmem:[#allocation2 + $0x48] sm:$0xff] }
 0x13d   :  { %1430 = vlog2.f32 %v799_v12  ;;  %v1075_v53 = vmul.f32 %v2190_v21, %v2128_v31  ;;  %vm1080_vm7 = vweird.f32 %v2190_v21 }
 0x13e   :  { %v859_v58 = vadd.f32 14.285714, %v812_v16  ;;  %1432 = vlog2.f32 %v803_v17  ;;  %v2246_v16 = vsel %vm913_vm8, 1.0, %v2229_v47  ;;  %v487_v17 = vld [vmem:[#allocation3 + $0x18] sm:$0xff]  ;;  %vm2297_vm15 = vmor %vm1079_vm3, %vm1080_vm7 }
 0x13f   :  { %v545_v32 = vpop.xlane.xlu0 %544  ;;  %1434 = vrcp.f32 %v2199_v25  ;;  %vm1034_vm11 = vweird.f32 %v2246_v16  ;;  %v1038_v50 = vand.u32 2147483647, %v2246_v16 }
 0x140   :  { %v562_v38 = vadd.f32 %v545_v32, %v498_v0  ;;  %v529_v39 = vpop.xlane.xlu1 %528  ;;  %v875_v29 = vmul.f32 %v859_v58, %v1978_v63  ;;  %v1076_v63 = vsub.f32 1.0, %v1075_v53  ;;  %v1083_v53 = vand.u32 2147483647, %v2128_v31 }
 0x141   :  { %v554_v48 = vadd.f32 %v529_v39, %v490_v26  ;;  %v414_v49 = vpop.xlane.xlu2 %413  ;;  %v791_v2 = vld [vmem:[#allocation2 + $0x60] sm:$0xff]  ;;  %v494_v26 = vld [vmem:[#allocation3 + $0x50] sm:$0xff]  ;;  %v1085_v39 = vand.u32 2147483648, %v2128_v31  ;;  %vm2405_vm7 = vcmp.eq.f32.partialorder %v1038_v50, 8.507059e+37 }
 0x142   :  { %578 = vst.msk [vmem:[#allocation3 + $0x70] sm:$0xff] %vm25_vm2, %v562_v38  ;;  %v440_v3 = vadd.f32 %v414_v49, %v376_v33  ;;  %v891_v52 = vsub.f32 %v843_v51, %v875_v29  ;;  %v807_v40 = vadd.f32 1e-06, %v791_v2  ;;  %v1077_v61 = vmul.f32 %v2190_v21, %v1076_v63  ;;  %v847_v51 = vld [vmem:[#allocation3 + $0x20] sm:$0xff] }
 0x143   :  { %v1431_v56 = vpop.eup %1430  ;;  %570 = vst.msk [vmem:[#allocation3 + $0x30] sm:$0xff] %vm25_vm2, %v554_v48  ;;  %v780_v45 = vld [vmem:[#allocation2 + $0x8] sm:$0xff]  ;;  %v1022_v2 = vsel %vm2252_vm5, %v2153_v1, %v1018_v15  ;;  %v2291_v1 = vsel %vm2220_vm4, %v2224_v46, %v962_v36  ;;  %vm2302_vm10 = vcmp.eq.f32.partialorder %v1083_v53, 8.507059e+37  ;;  %v1086_v36 = vor.u32 1.1754944e-38, %v1085_v39  ;;  %v373_v46 = vld [vmem:[#allocation2 + $0x10] sm:$0xff] }
 0x144   :  { %v1433_v57 = vpop.eup %1432  ;;  %457 = vst.msk [vmem:[#allocation2 + $0x28] sm:$0xff] %vm25_vm2, %v440_v3  ;;  %v953_v4 = vmul.f32 %v2121_v14, %v891_v52  ;;  %v820_v5 = vmul.f32 0.6931472, %v1431_v56  ;;  %1436 = vlog2.f32 %v807_v40  ;;  %v796_v10 = vadd.f32 1e-06, %v780_v45  ;;  %v851_v3 = vld [vmem:[#allocation3 + $0x40] sm:$0xff] }
 0x145   :  { %v2241_v11 = vpop.eup %1434  ;;  %v828_v12 = vmul.f32 0.6931472, %v1433_v57  ;;  %v2272_v54 = vadd.f32 %v2190_v21, %v1077_v61  ;;  %v2310_v35 = vsel %vm2262_vm0, %v1026_v62, %v1022_v2  ;;  %v384_v62 = vld [vmem:[#allocation2 + $0x68] sm:$0xff] }
 0x146   :  { %v1179_v18 = vmul.f32 -1.0, %v953_v4  ;;  %v863_v0 = vadd.f32 14.285714, %v820_v5  ;;  %1438 = vlog2.f32 %v796_v10  ;;  %v970_v32 = vmul.f32 %v2241_v11, %v2199_v25  ;;  %v491_v10 = vld [vmem:[#allocation3 + $0x38] sm:$0xff] }
 0x147   :  { %v422_v20 = vpop.xlane.xlu0 %421  ;;  %v867_v58 = vadd.f32 14.285714, %v828_v12  ;;  %1440 = vrcp.f32 %v2246_v16  ;;  %v1082_v45 = vsel %vm2297_vm15, %v2190_v21, %v2272_v54  ;;  %v980_v4 = vand.u32 2147483648, %v2199_v25 }
 0x148   :  { %v444_v33 = vadd.f32 %v422_v20, %v380_v8  ;;  %v523_v37 = vpop.xlane.xlu1 %522  ;;  %1197 = vperm.xlu2 %1380, %v1179_v18   ;;  %v879_v23 = vmul.f32 %v863_v0, %v1995_v28  ;;  %v971_v19 = vsub.f32 1.0, %v970_v32  ;;  %v855_v18 = vld [vmem:[#allocation3 + $0x60] sm:$0xff]  ;;  %vm975_vm13 = vweird.f32 %v2241_v11 }
 0x149   :  { %v537_v29 = vpop.xlane.xlu2 %536  ;;  %v551_v48 = vadd.f32 %v523_v37, %v487_v17  ;;  %v883_v49 = vmul.f32 %v867_v58, %v1988_v27  ;;  %v1132_v27 = vsel %vm2209_vm1, %v2201_v30, %v1127_v34  ;;  %v978_v37 = vand.u32 2147483647, %v2199_v25  ;;  %vm2356_vm14 = vmor %vm974_vm9, %vm975_vm13 }
 0x14a   :  { %v1437_v63 = vpop.eup %1436  ;;  %461 = vst.msk [vmem:[#allocation2 + $0x48] sm:$0xff] %vm25_vm2, %v444_v33  ;;  %v558_v28 = vadd.f32 %v537_v29, %v494_v26  ;;  %v895_v52 = vsub.f32 %v847_v51, %v879_v23  ;;  %v972_v21 = vmul.f32 %v2241_v11, %v971_v19  ;;  %v377_v51 = vld [vmem:[#allocation2 + $0x30] sm:$0xff] }
 0x14b   :  { %567 = vst.msk [vmem:[#allocation3 + $0x18] sm:$0xff] %vm25_vm2, %v551_v48  ;;  %v899_v9 = vsub.f32 %v851_v3, %v883_v49  ;;  %v836_v13 = vmul.f32 0.6931472, %v1437_v63  ;;  %v784_v43 = vld [vmem:[#allocation2 + $0x28] sm:$0xff]  ;;  %v2365_v3 = vld [vmem:[%s2680_s4 + $0x58] sm:$0xff]  ;;  %v385_v19 = vld [vmem:[#allocation2 + $0x70] sm:$0xff] }
 0x14c   :  { %v1439_v30 = vpop.eup %1438  ;;  %574 = vst.msk [vmem:[#allocation3 + $0x50] sm:$0xff] %vm25_vm2, %v558_v28  ;;  %v1013_v34 = vmul.f32 %v2194_v22, %v895_v52  ;;  %v800_v31 = vadd.f32 1e-06, %v784_v43  ;;  %v2322_v22 = vld [vmem:[%s2680_s4 + $0x18] sm:$0xff]  ;;  %v973_v39 = vadd.f32 %v2241_v11, %v972_v21  ;;  %v1040_v28 = vand.u32 2147483648, %v2246_v16 }
 0x14d   :  { %v2312_v41 = vpop.eup %1440  ;;  %v1073_v40 = vmul.f32 %v2179_v6, %v899_v9  ;;  %v871_v55 = vadd.f32 14.285714, %v836_v13  ;;  %v814_v56 = vmul.f32 0.6931472, %v1439_v30  ;;  %vm910_vm12 = vcmp.eq.f32.partialorder %v2322_v22, 0.0  ;;  %v499_v52 = vld [vmem:[#allocation3 + $0x78] sm:$0xff] }
 0x14e   :  { %v1183_v57 = vmul.f32 -1.0, %v1013_v34  ;;  %1442 = vlog2.f32 %v800_v31  ;;  %v1030_v6 = vmul.f32 %v2312_v41, %v2246_v16  ;;  %v2347_v29 = vsel %vm910_vm12, 1.0, %v2322_v22  ;;  %v2379_v13 = vld [vmem:[%s2680_s4 + $0x78] sm:$0xff] }
 0x14f   :  { %v408_v5 = vpop.xlane.xlu0 %407  ;;  %v1187_v8 = vmul.f32 -1.0, %v1073_v40  ;;  %v887_v12 = vmul.f32 %v871_v55, %v2014_v60  ;;  %v860_v15 = vadd.f32 14.285714, %v814_v56  ;;  %v2336_v60 = vld [vmem:[%s2680_s4 + $0x50] sm:$0xff]  ;;  %vm1035_vm1 = vweird.f32 %v2312_v41 }
 0x150   :  { %v437_v61 = vadd.f32 %v408_v5, %v373_v46  ;;  %v430_v17 = vpop.xlane.xlu1 %429  ;;  %1217 = vperm.xlu2 %1380, %v1183_v57   ;;  %v1031_v0 = vsub.f32 1.0, %v1030_v6  ;;  %vm917_vm4 = vcmp.eq.f32.partialorder %v2336_v60, 0.0  ;;  %vm2381_vm6 = vcmp.eq.f32.partialorder %v978_v37, 8.507059e+37  ;;  %vm2389_vm3 = vmor %vm1034_vm11, %vm1035_vm1  ;;  %v848_v5 = vld [vmem:[#allocation3 + $0x28] sm:$0xff] }
 0x151   :  { %v531_v14 = vpop.xlane.xlu2 %530  ;;  %v448_v20 = vadd.f32 %v430_v17, %v384_v62  ;;  %1237 = vperm.xlu1 %1379, %v1187_v8   ;;  %v903_v26 = vsub.f32 %v855_v18, %v887_v12  ;;  %v876_v58 = vmul.f32 %v860_v15, %v2027_v44  ;;  %v788_v53 = vld [vmem:[#allocation2 + $0x48] sm:$0xff]  ;;  %v2374_v9 = vsel %vm917_vm4, 1.0, %v2336_v60 }
 0x152   :  { %454 = vst.msk [vmem:[#allocation2 + $0x10] sm:$0xff] %vm25_vm2, %v437_v61  ;;  %v555_v32 = vadd.f32 %v531_v14, %v491_v10  ;;  %v804_v33 = vadd.f32 1e-06, %v788_v53  ;;  %v1032_v23 = vmul.f32 %v2312_v41, %v1031_v0  ;;  %v844_v44 = vld [vmem:[#allocation3 + $0x8] sm:$0xff]  ;;  %v981_v34 = vor.u32 1.1754944e-38, %v980_v4  ;;  %v495_v14 = vld [vmem:[#allocation3 + $0x58] sm:$0xff] }
 0x153   :  { %465 = vst.msk [vmem:[#allocation2 + $0x68] sm:$0xff] %vm25_vm2, %v448_v20  ;;  %v1133_v38 = vmul.f32 %v1132_v27, %v903_v26  ;;  %v892_v49 = vsub.f32 %v844_v44, %v876_v58  ;;  %v2369_v27 = vsel %vm2302_vm10, %v1086_v36, %v1082_v45  ;;  %v977_v55 = vsel %vm2356_vm14, %v2241_v11, %v973_v39 }
 0x154   :  { %v1443_v48 = vpop.eup %1442  ;;  %571 = vst.msk [vmem:[#allocation3 + $0x38] sm:$0xff] %vm25_vm2, %v555_v32  ;;  %1444 = vlog2.f32 %v804_v33  ;;  %v1033_v25 = vadd.f32 %v2312_v41, %v1032_v23  ;;  %vm918_vm8 = vcmp.eq.f32.partialorder %v2365_v3, 0.0  ;;  %v1041_v57 = vor.u32 1.1754944e-38, %v1040_v28  ;;  %v381_v32 = vld [vmem:[#allocation2 + $0x50] sm:$0xff] }
 0x155   :  { %v1191_v2 = vmul.f32 -1.0, %v1133_v38  ;;  %v822_v54 = vmul.f32 0.6931472, %v1443_v48  ;;  %1446 = vrcp.f32 %v2347_v29  ;;  %v968_v40 = vmul.f32 %v2291_v1, %v892_v49  ;;  %v374_v38 = vld [vmem:[#allocation2 + $0x18] sm:$0xff] }
 0x156   :  { %1448 = vrcp.f32 %v2374_v9  ;;  %vm922_vm5 = vcmp.eq.f32.partialorder %v2379_v13, 0.0  ;;  %v1037_v11 = vsel %vm2389_vm3, %v2312_v41, %v1033_v25  ;;  %v2414_v15 = vsel %vm2381_vm6, %v981_v34, %v977_v55  ;;  %v2424_v41 = vld [vmem:[%s2680_s4 + $0x38] sm:$0xff] }
 0x157   :  { %v416_v43 = vpop.xlane.xlu0 %415  ;;  %1257 = vperm.xlu0 %1378, %v1191_v2   ;;  %v864_v30 = vadd.f32 14.285714, %v822_v54  ;;  %v2419_v21 = vsel %vm918_vm8, 1.0, %v2365_v3  ;;  %v1180_v61 = vmul.f32 -1.0, %v968_v40  ;;  %v2432_v18 = vsel %vm922_vm5, 1.0, %v2379_v13 }
 0x158   :  { %v441_v36 = vadd.f32 %v416_v43, %v377_v51  ;;  %v547_v46 = vpop.xlane.xlu1 %546  ;;  %v2439_v58 = vsel %vm2405_vm7, %v1041_v57, %v1037_v11  ;;  %v995_v53 = vand.u32 2147483648, %v2347_v29  ;;  %vm914_vm0 = vcmp.eq.f32.partialorder %v2424_v41, 0.0  ;;  %v852_v51 = vld [vmem:[#allocation3 + $0x48] sm:$0xff]  ;;  %v378_v57 = vld [vmem:[#allocation2 + $0x38] sm:$0xff] }
 0x159   :  { %v432_v56 = vpop.xlane.xlu2 %431  ;;  %v563_v45 = vadd.f32 %v547_v46, %v499_v52  ;;  %v880_v16 = vmul.f32 %v864_v30, %v2055_v42  ;;  %v781_v62 = vld [vmem:[#allocation2 + $0x10] sm:$0xff]  ;;  %v1100_v39 = vand.u32 2147483648, %v2374_v9  ;;  %vm989_vm15 = vweird.f32 %v2347_v29  ;;  %v382_v11 = vld [vmem:[#allocation2 + $0x58] sm:$0xff] }
 0x15a   :  { %v1445_v4 = vpop.eup %1444  ;;  %458 = vst.msk [vmem:[#allocation2 + $0x30] sm:$0xff] %vm25_vm2, %v441_v36  ;;  %v449_v6 = vadd.f32 %v432_v56, %v385_v19  ;;  %v797_v1 = vadd.f32 1e-06, %v781_v62  ;;  %v993_v2 = vand.u32 2147483647, %v2347_v29  ;;  %v2451_v50 = vor.u32 1.1754944e-38, %v995_v53 }
 0x15b   :  { %v2409_v8 = vpop.eup %1446  ;;  %579 = vst.msk [vmem:[#allocation3 + $0x78] sm:$0xff] %vm25_vm2, %v563_v45  ;;  %v896_v42 = vsub.f32 %v848_v5, %v880_v16  ;;  %v830_v12 = vmul.f32 0.6931472, %v1445_v4  ;;  %vm1094_vm10 = vweird.f32 %v2374_v9  ;;  %v1098_v36 = vand.u32 2147483647, %v2374_v9  ;;  %v386_v56 = vld [vmem:[#allocation2 + $0x78] sm:$0xff] }
 0x15c   :  { %466 = vst.msk [vmem:[#allocation2 + $0x70] sm:$0xff] %vm25_vm2, %v449_v6  ;;  %1450 = vlog2.f32 %v797_v1  ;;  %v985_v17 = vmul.f32 %v2409_v8, %v2347_v29  ;;  %v2434_v0 = vpop.eup %1448  ;;  %vm990_vm9 = vweird.f32 %v2409_v8  ;;  %v2465_v40 = vor.u32 1.1754944e-38, %v1100_v39 }
 0x15d   :  { %v1028_v20 = vmul.f32 %v2310_v35, %v896_v42  ;;  %v868_v26 = vadd.f32 14.285714, %v830_v12  ;;  %v1090_v37 = vmul.f32 %v2434_v0, %v2374_v9  ;;  %1452 = vrcp.f32 %v2419_v21  ;;  %vm2489_vm1 = vmor %vm989_vm15, %vm990_vm9 }
 0x15e   :  { %v986_v33 = vsub.f32 1.0, %v985_v17  ;;  %1454 = vrcp.f32 %v2432_v18  ;;  %vm1095_vm12 = vweird.f32 %v2434_v0  ;;  %vm1169_vm13 = vweird.f32 %v2432_v18 }
 0x15f   :  { %v539_v23 = vpop.xlane.xlu0 %538  ;;  %1202 = vperm.xlu0 %1378, %v1180_v61   ;;  %v1184_v35 = vmul.f32 -1.0, %v1028_v20  ;;  %v884_v44 = vmul.f32 %v868_v26, %v2091_v24  ;;  %v1091_v54 = vsub.f32 1.0, %v1090_v37  ;;  %v1115_v62 = vand.u32 2147483648, %v2419_v21  ;;  %v845_v20 = vld [vmem:[#allocation3 + $0x10] sm:$0xff]  ;;  %vm2506_vm6 = vmor %vm1094_vm10, %vm1095_vm12 }
 0x160   :  { %v559_v48 = vadd.f32 %v539_v23, %v495_v14  ;;  %v424_v49 = vpop.xlane.xlu1 %423  ;;  %v987_v30 = vmul.f32 %v2409_v8, %v986_v33  ;;  %vm1109_vm11 = vweird.f32 %v2419_v21  ;;  %v1173_v5 = vand.u32 2147483647, %v2432_v18 }
 0x161   :  { %v445_v63 = vadd.f32 %v424_v49, %v381_v32  ;;  %v410_v28 = vpop.xlane.xlu2 %409  ;;  %1222 = vperm.xlu1 %1379, %v1184_v35   ;;  %v900_v52 = vsub.f32 %v852_v51, %v884_v44  ;;  %v785_v25 = vld [vmem:[#allocation2 + $0x30] sm:$0xff]  ;;  %v1092_v31 = vmul.f32 %v2434_v0, %v1091_v54  ;;  %v1113_v61 = vand.u32 2147483647, %v2419_v21 }
 0x162   :  { %v1451_v24 = vpop.eup %1450  ;;  %575 = vst.msk [vmem:[#allocation3 + $0x58] sm:$0xff] %vm25_vm2, %v559_v48  ;;  %v438_v43 = vadd.f32 %v410_v28, %v374_v38  ;;  %v801_v19 = vadd.f32 1e-06, %v785_v25  ;;  %v2474_v4 = vadd.f32 %v2409_v8, %v987_v30  ;;  %v2499_v23 = vsel %vm914_vm0, 1.0, %v2424_v41  ;;  %v853_v28 = vld [vmem:[#allocation3 + $0x50] sm:$0xff] }
 0x163   :  { %462 = vst.msk [vmem:[#allocation2 + $0x50] sm:$0xff] %vm25_vm2, %v445_v63  ;;  %v1088_v7 = vmul.f32 %v2369_v27, %v900_v52  ;;  %v816_v34 = vmul.f32 0.6931472, %v1451_v24  ;;  %v2461_v46 = vpop.eup %1452  ;;  %v2482_v42 = vadd.f32 %v2434_v0, %v1092_v31  ;;  %v1175_v49 = vand.u32 2147483648, %v2432_v18 }
 0x164   :  { %455 = vst.msk [vmem:[#allocation2 + $0x18] sm:$0xff] %vm25_vm2, %v438_v43  ;;  %1456 = vlog2.f32 %v801_v19  ;;  %v2468_v55 = vpop.eup %1454  ;;  %v1105_v16 = vmul.f32 %v2461_v46, %v2419_v21  ;;  %vm1110_vm4 = vweird.f32 %v2461_v46  ;;  %v992_v9 = vsel %vm2489_vm1, %v2409_v8, %v2474_v4  ;;  %v793_v43 = vld [vmem:[#allocation2 + $0x70] sm:$0xff] }
 0x165   :  { %v1188_v27 = vmul.f32 -1.0, %v1088_v7  ;;  %v861_v45 = vadd.f32 14.285714, %v816_v34  ;;  %v1165_v6 = vmul.f32 %v2468_v55, %v2432_v18  ;;  %vm1170_vm14 = vweird.f32 %v2468_v55  ;;  %vm2535_vm5 = vmor %vm1109_vm11, %vm1110_vm4  ;;  %v2557_v34 = vld [vmem:[%s2680_s4 + $0x70] sm:$0xff]  ;;  %v2570_v18 = vld [vmem:[%s2680_s4 + $0x68] sm:$0xff]  ;;  %s1506_s4 = smov [#allocation4]  }
 0x166   :  { %v1106_v12 = vsub.f32 1.0, %v1105_v16  ;;  %1458 = vrcp.f32 %v2499_v23  ;;  %vm2521_vm3 = vcmp.eq.f32.partialorder %v993_v2, 8.507059e+37  ;;  %vm2525_vm8 = vcmp.eq.f32.partialorder %v1098_v36, 8.507059e+37  ;;  %s1295_s14 = sshll.u32 %s1506_s4, 4  ;;  %s1296_s14 = int_to_ptr.vmem [resolvable:$true] %s1295_s14 }
 0x167   :  { %v434_v1 = vpop.xlane.xlu0 %433  ;;  %1242 = vperm.xlu0 %1378, %v1188_v27   ;;  %v877_v10 = vmul.f32 %v861_v45, %v2148_v59  ;;  %v1166_v59 = vsub.f32 1.0, %v1165_v6  ;;  %v1116_v8 = vor.u32 1.1754944e-38, %v1115_v62  ;;  %v1097_v7 = vsel %vm2506_vm6, %v2434_v0, %v2482_v42 }
 0x168   :  { %v450_v17 = vadd.f32 %v434_v1, %v386_v56  ;;  %v418_v14 = vpop.xlane.xlu1 %417  ;;  %v1107_v37 = vmul.f32 %v2461_v46, %v1106_v12  ;;  %vm2559_vm7 = vcmp.eq.f32.partialorder %v1113_v61, 8.507059e+37  ;;  %vm2563_vm0 = vcmp.eq.f32.partialorder %v1173_v5, 8.507059e+37  ;;  %v792_v56 = vld [vmem:[#allocation2 + $0x68] sm:$0xff] }
 0x169   :  { %v442_v53 = vadd.f32 %v418_v14, %v378_v57  ;;  %v426_v32 = vpop.xlane.xlu2 %425  ;;  %v893_v33 = vsub.f32 %v845_v20, %v877_v10  ;;  %v1167_v48 = vmul.f32 %v2468_v55, %v1166_v59  ;;  %v1176_v36 = vor.u32 1.1754944e-38, %v1175_v49  ;;  %v849_v57 = vld [vmem:[#allocation3 + $0x30] sm:$0xff] }
 0x16a   :  { %v1457_v38 = vpop.eup %1456  ;;  %467 = vst.msk [vmem:[#allocation2 + $0x78] sm:$0xff] %vm25_vm2, %v450_v17  ;;  %v446_v35 = vadd.f32 %v426_v32, %v382_v11  ;;  %v789_v44 = vld [vmem:[#allocation2 + $0x50] sm:$0xff]  ;;  %v1108_v24 = vadd.f32 %v2461_v46, %v1107_v37  ;;  %vm1049_vm15 = vweird.f32 %v2499_v23  ;;  %v1053_v45 = vand.u32 2147483647, %v2499_v23 }
 0x16b   :  { %459 = vst.msk [vmem:[#allocation2 + $0x38] sm:$0xff] %vm25_vm2, %v442_v53  ;;  %v983_v51 = vmul.f32 %v2414_v15, %v893_v33  ;;  %v824_v54 = vmul.f32 0.6931472, %v1457_v38  ;;  %v782_v63 = vld [vmem:[#allocation2 + $0x18] sm:$0xff]  ;;  %v805_v52 = vadd.f32 1e-06, %v789_v44  ;;  %v2540_v2 = vadd.f32 %v2468_v55, %v1167_v48 }
 0x16c   :  { %463 = vst.msk [vmem:[#allocation2 + $0x58] sm:$0xff] %vm25_vm2, %v446_v35  ;;  %v798_v15 = vadd.f32 1e-06, %v782_v63  ;;  %vm2550_vm2 = vmor %vm1169_vm13, %vm1170_vm14  ;;  %v809_v16 = vadd.f32 1e-06, %v793_v43  ;;  %v2575_v62 = vpop.eup %1458  ;;  %v1112_v4 = vsel %vm2535_vm5, %v2461_v46, %v1108_v24  ;;  %v1055_v5 = vand.u32 2147483648, %v2499_v23 }
 0x16d   :  { %v1181_v19 = vmul.f32 -1.0, %v983_v51  ;;  %v865_v30 = vadd.f32 14.285714, %v824_v54  ;;  %1460 = vlog2.f32 %v805_v52  ;;  %v1172_v6 = vsel %vm2550_vm2, %v2468_v55, %v2540_v2 }
 0x16e   :  { %1462 = vlog2.f32 %v798_v15  ;;  %vm921_vm10 = vcmp.eq.f32.partialorder %v2557_v34, 0.0  ;;  %v1045_v11 = vmul.f32 %v2575_v62, %v2499_v23  ;;  %v808_v10 = vadd.f32 1e-06, %v792_v56  ;;  %v846_v15 = vld [vmem:[#allocation3 + $0x18] sm:$0xff] }
 0x16f   :  { %1207 = vperm.xlu1 %1379, %v1181_v19   ;;  %v881_v27 = vmul.f32 %v865_v30, %v2229_v47  ;;  %vm920_vm9 = vcmp.eq.f32.partialorder %v2570_v18, 0.0  ;;  %vm1050_vm12 = vweird.f32 %v2575_v62  ;;  %1464 = vlog2.f32 %v809_v16 }
 0x170   :  { %v2591_v46 = vsel %vm921_vm10, 1.0, %v2557_v34  ;;  %v1046_v20 = vsub.f32 1.0, %v1045_v11  ;;  %v2598_v32 = vsel %vm920_vm9, 1.0, %v2570_v18  ;;  %v1102_v44 = vsel %vm2525_vm8, %v2465_v40, %v1097_v7  ;;  %vm2619_vm13 = vmor %vm1049_vm15, %vm1050_vm12 }
 0x171   :  { %v897_v47 = vsub.f32 %v849_v57, %v881_v27  ;;  %v794_v1 = vld [vmem:[#allocation2 + $0x78] sm:$0xff]  ;;  %1466 = vrcp.f32 %v2591_v46  ;;  %v2609_v48 = vsel %vm2559_vm7, %v1116_v8, %v1112_v4  ;;  %vm2623_vm11 = vcmp.eq.f32.partialorder %v1053_v45, 8.507059e+37 }
 0x172   :  { %v810_v42 = vadd.f32 1e-06, %v794_v1  ;;  %v786_v12 = vld [vmem:[#allocation2 + $0x38] sm:$0xff]  ;;  %v1047_v38 = vmul.f32 %v2575_v62, %v1046_v20  ;;  %v1056_v52 = vor.u32 1.1754944e-38, %v1055_v5  ;;  %vm1154_vm1 = vweird.f32 %v2591_v46 }
 0x173   :  { %v1461_v55 = vpop.eup %1460  ;;  %v1043_v61 = vmul.f32 %v2439_v58, %v897_v47  ;;  %v790_v17 = vld [vmem:[#allocation2 + $0x58] sm:$0xff]  ;;  %v802_v14 = vadd.f32 1e-06, %v786_v12  ;;  %v997_v58 = vsel %vm2521_vm3, %v2451_v50, %v992_v9  ;;  %v1177_v50 = vsel %vm2563_vm0, %v1176_v36, %v1172_v6 }
 0x174   :  { %v1463_v26 = vpop.eup %1462  ;;  %v832_v59 = vmul.f32 0.6931472, %v1461_v55  ;;  %v806_v53 = vadd.f32 1e-06, %v790_v17  ;;  %1468 = vlog2.f32 %v810_v42  ;;  %v1048_v49 = vadd.f32 %v2575_v62, %v1047_v38  ;;  %v858_v42 = vld [vmem:[#allocation3 + $0x78] sm:$0xff] }
 0x175   :  { %v1185_v33 = vmul.f32 -1.0, %v1043_v61  ;;  %v818_v37 = vmul.f32 0.6931472, %v1463_v26  ;;  %1470 = vlog2.f32 %v802_v14  ;;  %v1465_v51 = vpop.eup %1464  ;;  %v1158_v23 = vand.u32 2147483647, %v2591_v46  ;;  %v850_v26 = vld [vmem:[#allocation3 + $0x38] sm:$0xff] }
 0x176   :  { %v869_v35 = vadd.f32 14.285714, %v832_v59  ;;  %1472 = vlog2.f32 %v806_v53  ;;  %v1160_v8 = vand.u32 2147483648, %v2591_v46  ;;  %vm1139_vm4 = vweird.f32 %v2598_v32  ;;  %v854_v53 = vld [vmem:[#allocation3 + $0x58] sm:$0xff] }
 0x177   :  { %1227 = vperm.xlu0 %1378, %v1185_v33   ;;  %v862_v39 = vadd.f32 14.285714, %v818_v37  ;;  %1474 = vlog2.f32 %v808_v10  ;;  %v2628_v9 = vpop.eup %1466  ;;  %v840_v30 = vmul.f32 0.6931472, %v1465_v51  ;;  %v1143_v36 = vand.u32 2147483647, %v2598_v32 }
 0x178   :  { %v885_v54 = vmul.f32 %v869_v35, %v2336_v60  ;;  %1476 = vrcp.f32 %v2598_v32  ;;  %v1150_v29 = vmul.f32 %v2628_v9, %v2591_v46  ;;  %vm1155_vm14 = vweird.f32 %v2628_v9 }
 0x179   :  { %v878_v60 = vmul.f32 %v862_v39, %v2322_v22  ;;  %v1052_v22 = vsel %vm2619_vm13, %v2575_v62, %v1048_v49  ;;  %v873_v10 = vadd.f32 14.285714, %v840_v30  ;;  %vm2655_vm6 = vmor %vm1154_vm1, %vm1155_vm14  ;;  %v1161_v39 = vor.u32 1.1754944e-38, %v1160_v8 }
 0x17a   :  { %v1469_v25 = vpop.eup %1468  ;;  %v901_v24 = vsub.f32 %v853_v28, %v885_v54  ;;  %v1151_v0 = vsub.f32 1.0, %v1150_v29  ;;  %v1057_v55 = vsel %vm2623_vm11, %v1056_v52, %v1052_v22  ;;  %vm1159_vm8 = vcmp.eq.f32.partialorder %v1158_v23, 8.507059e+37  ;;  %v856_v54 = vld [vmem:[#allocation3 + $0x68] sm:$0xff] }
 0x17b   :  { %v1471_v2 = vpop.eup %1470  ;;  %v894_v43 = vsub.f32 %v846_v15, %v878_v60  ;;  %v842_v19 = vmul.f32 0.6931472, %v1469_v25  ;;  %v889_v35 = vmul.f32 %v873_v10, %v2557_v34  ;;  %v857_v34 = vld [vmem:[#allocation3 + $0x70] sm:$0xff]  ;;  %vm1144_vm2 = vcmp.eq.f32.partialorder %v1143_v36, 8.507059e+37 }
 0x17c   :  { %v1473_v7 = vpop.eup %1472  ;;  %v1103_v21 = vmul.f32 %v1102_v44, %v901_v24  ;;  %v826_v31 = vmul.f32 0.6931472, %v1471_v2  ;;  %v1152_v5 = vmul.f32 %v2628_v9, %v1151_v0 }
 0x17d   :  { %v1475_v56 = vpop.eup %1474  ;;  %v998_v27 = vmul.f32 %v997_v58, %v894_v43  ;;  %v834_v45 = vmul.f32 0.6931472, %v1473_v7  ;;  %v874_v16 = vadd.f32 14.285714, %v842_v19  ;;  %v905_v52 = vsub.f32 %v857_v34, %v889_v35 }
 0x17e   :  { %v1477_v57 = vpop.eup %1476  ;;  %v1189_v4 = vmul.f32 -1.0, %v1103_v21  ;;  %v866_v6 = vadd.f32 14.285714, %v826_v31  ;;  %v838_v47 = vmul.f32 0.6931472, %v1475_v56  ;;  %v1153_v59 = vadd.f32 %v2628_v9, %v1152_v5 }
 0x17f   :  { %v1182_v62 = vmul.f32 -1.0, %v998_v27  ;;  %v870_v1 = vadd.f32 14.285714, %v834_v45  ;;  %v890_v11 = vmul.f32 %v874_v16, %v2379_v13  ;;  %v1135_v17 = vmul.f32 %v1477_v57, %v2598_v32 }
 0x180   :  { %1247 = vperm.xlu2 %1380, %v1189_v4   ;;  %v882_v12 = vmul.f32 %v866_v6, %v2424_v41  ;;  %v872_v61 = vadd.f32 14.285714, %v838_v47  ;;  %v1145_v13 = vand.u32 2147483648, %v2598_v32  ;;  %vm1140_vm3 = vweird.f32 %v1477_v57 }
 0x181   :  { %1212 = vperm.xlu0 %1378, %v1182_v62   ;;  %v886_v14 = vmul.f32 %v870_v1, %v2365_v3  ;;  %v906_v20 = vsub.f32 %v858_v42, %v890_v11  ;;  %v1136_v38 = vsub.f32 1.0, %v1135_v17  ;;  %v1157_v46 = vsel %vm2655_vm6, %v2628_v9, %v1153_v59  ;;  %vm2667_vm5 = vmor %vm1139_vm4, %vm1140_vm3 }
 0x182   :  { %v898_v33 = vsub.f32 %v850_v26, %v882_v12  ;;  %v888_v37 = vmul.f32 %v872_v61, %v2570_v18  ;;  %v1162_v25 = vsel %vm1159_vm8, %v1161_v39, %v1157_v46 }
 0x183   :  { %v902_v3 = vsub.f32 %v854_v53, %v886_v14  ;;  %v1178_v58 = vmul.f32 %v1177_v50, %v906_v20  ;;  %v1137_v49 = vmul.f32 %v1477_v57, %v1136_v38  ;;  %v1146_v50 = vor.u32 1.1754944e-38, %v1145_v13 }
 0x184   :  { %v1058_v44 = vmul.f32 %v1057_v55, %v898_v33  ;;  %v904_v63 = vsub.f32 %v856_v54, %v888_v37  ;;  %v1163_v15 = vmul.f32 %v1162_v25, %v905_v52 }
 0x185   :  { %v1118_v51 = vmul.f32 %v2609_v48, %v902_v3  ;;  %v1138_v60 = vadd.f32 %v1477_v57, %v1137_v49  ;;  %v1194_v48 = vmul.f32 -1.0, %v1178_v58 }
 0x186   :  { %v1186_v40 = vmul.f32 -1.0, %v1058_v44  ;;  %v1193_v29 = vmul.f32 -1.0, %v1163_v15 }
 0x187   :  { %v1190_v28 = vmul.f32 -1.0, %v1118_v51  ;;  %v1142_v9 = vsel %vm2667_vm5, %v1477_v57, %v1138_v60 }
 0x188   :  { %1232 = vperm.xlu2 %1380, %v1186_v40   ;;  %v1147_v32 = vsel %vm1144_vm2, %v1146_v50, %v1142_v9 }
 0x189   :  { %1252 = vperm.xlu1 %1379, %v1190_v28   ;;  %1272 = vperm.xlu0 %1378, %v1194_v48   ;;  %v1148_v23 = vmul.f32 %v1147_v32, %v904_v63 }
 0x18b   :  { %v1192_v24 = vmul.f32 -1.0, %v1148_v23 }
 0x190   :  { %1262 = vperm.xlu2 %1380, %v1192_v24  }
 0x191   :  { %1267 = vperm.xlu1 %1379, %v1193_v29  }
 0x1a2   :  { %v1198_v8 = vpop.permute.xlu2 %1197 }
 0x1a3   :  { %1275 = vst [vmem:[#allocation4] sm:$0xff] %v1198_v8 }
 0x1aa   :  { %v1218_v2 = vpop.permute.xlu2 %1217 }
 0x1ab   :  { %1279 = vst [vmem:[#allocation4 + $0x20] sm:$0xff] %v1218_v2 }
 0x1c3   :  { %v1238_v43 = vpop.permute.xlu1 %1237 }
 0x1c4   :  { %1283 = vst [vmem:[#allocation4 + $0x40] sm:$0xff] %v1238_v43 }
 0x1c9   :  { %v1258_v19 = vpop.permute.xlu0 %1257 }
 0x1ca   :  { %1287 = vst [vmem:[#allocation4 + $0x60] sm:$0xff] %v1258_v19 }
 0x1d1   :  { %v1203_v22 = vpop.permute.xlu0 %1202 }
 0x1d2   :  { %1276 = vst [vmem:[#allocation4 + $0x8] sm:$0xff] %v1203_v22 }
 0x1d3   :  { %v1223_v30 = vpop.permute.xlu1 %1222 }
 0x1d4   :  { %1280 = vst [vmem:[#allocation4 + $0x28] sm:$0xff] %v1223_v30 }
 0x1d9   :  { %v1243_v7 = vpop.permute.xlu0 %1242 }
 0x1da   :  { %1284 = vst [vmem:[#allocation4 + $0x48] sm:$0xff] %v1243_v7  ;;  %v1248_v21 = vpop.permute.xlu2 %1247 }
 0x1db   :  { %1285 = vst [vmem:[#allocation4 + $0x50] sm:$0xff] %v1248_v21 }
 0x1e1   :  { %v1208_v31 = vpop.permute.xlu1 %1207 }
 0x1e2   :  { %1277 = vst [vmem:[#allocation4 + $0x10] sm:$0xff] %v1208_v31  ;;  %v1233_v0 = vpop.permute.xlu2 %1232 }
 0x1e3   :  { %1282 = vst [vmem:[#allocation4 + $0x38] sm:$0xff] %v1233_v0 }
 0x1e9   :  { %v1228_v36 = vpop.permute.xlu0 %1227 }
 0x1ea   :  { %1281 = vst [vmem:[#allocation4 + $0x30] sm:$0xff] %v1228_v36  ;;  %v1263_v56 = vpop.permute.xlu2 %1262 }
 0x1eb   :  { %1288 = vst [vmem:[#allocation4 + $0x68] sm:$0xff] %v1263_v56 }
 0x1f3   :  { %v1213_v27 = vpop.permute.xlu0 %1212 }
 0x1f4   :  { %1278 = vst [vmem:[#allocation4 + $0x18] sm:$0xff] %v1213_v27 }
 0x1fb   :  { %v1253_v45 = vpop.permute.xlu1 %1252  ;;  %v1273_v16 = vpop.permute.xlu0 %1272 }
 0x1fc   :  { %1286 = vst [vmem:[#allocation4 + $0x58] sm:$0xff] %v1253_v45 }
 0x1fd   :  { %1290 = vst [vmem:[#allocation4 + $0x78] sm:$0xff] %v1273_v16 }
 0x203   :  { %v1268_v57 = vpop.permute.xlu1 %1267 }
 0x204   :  { %1289 = vst [vmem:[#allocation4 + $0x70] sm:$0xff] %v1268_v57 }
 0x205   :  { %1303 = dma.vmem_to_hbm [thread:$0]  %s1296_s14, 2048, %s1298_s17, [#allocation5], %s1507_s18, %s1507_s18, %s1508_s19  }
 0x206   :  { %1502 = dma.done.wait [#allocation5], 2048  }
 0x207   :  { %1503 = vsyncadd [#allocation5], 4294965248 }
 0x208   :  { %1308 = vsyncpa [#allocation5], 1 }

</bundles_post_ra>
